<compile_context>
chip_gen: v6e
topology: v6e:2x2x1
jax: 0.10.0
libtpu: 0.0.40
codegen_flags: <defaults>
</compile_context>

<pallas_src>
import jax
import jax.numpy as jnp
from jax.experimental import pallas as pl
from jax.experimental.pallas import tpu as pltpu

D_IN_ROWS = 32
D_IN_COLS = 128
K_IN = D_IN_ROWS * D_IN_COLS      # 4096 flattened input features per item
D_MODEL = 256                     # encoder latent / pos-emb dim
N_POS = 4                         # number of positions


def _enc_kernel(x_ref, w_ref, posb_ref, o_ref):
    """One row tile: out = x @ W + (pos_emb + bias), single shot.

    x_ref    : (tn, 4096) bf16   row tile of the flattened input
    w_ref    : (4096, 256) bf16  full weight, resident in VMEM (constant index)
    posb_ref : (tn, 256)  f32    pos-emb + bias; row j -> position j % 4
    o_ref    : (tn, 256)  f32    output tile
    """
    acc = jnp.dot(x_ref[...], w_ref[...], preferred_element_type=jnp.float32)
    o_ref[...] = (acc + posb_ref[...]).astype(o_ref.dtype)


def acc_external_encoder(pr_mat, w_enc, b_enc, pos_emb, *, tn=256):
    """pr_mat: (bs, 4, 32, 128) -> (bs, 4, 256)."""
    bs = pr_mat.shape[0]
    n = bs * N_POS

    # Row tile: multiple of N_POS (so the pos pattern tiles cleanly), divides
    # N, and (when < N) a multiple of 8 for the (8,128) sublane constraint.
    tn = min(tn, n)
    while n % tn != 0 or tn % N_POS != 0:
        tn -= N_POS
    assert tn >= N_POS and n % tn == 0 and tn % N_POS == 0, (n, tn)
    assert tn == n or tn % 8 == 0, (n, tn)

    # Glue: flatten to (N, K); cast inputs/weights to bf16 (HBM-bound on the
    # weight/x streams). Accumulation and epilogue stay f32.
    x = pr_mat.reshape(n, K_IN).astype(jnp.bfloat16)
    w = w_enc.astype(jnp.bfloat16)

    # Fold bias into the positional embedding and build ONE small resident
    # (tn, 256) tile: row j of any row tile corresponds to position j % 4
    # because tn % 4 == 0.
    posb = jnp.tile(
        (pos_emb + b_enc[None, :]).astype(jnp.float32), (tn // N_POS, 1)
    )  # (tn, 256)

    flops = 2 * n * K_IN * D_MODEL
    bytes_accessed = (
        n * K_IN * 2            # x (bf16)
        + K_IN * D_MODEL * 2    # W (bf16), resident
        + tn * D_MODEL * 4      # pos+bias tile, resident
        + n * D_MODEL * 4       # output (f32)
    )

    out = pl.pallas_call(
        _enc_kernel,
        out_shape=jax.ShapeDtypeStruct((n, D_MODEL), jnp.float32),
        grid=(n // tn,),
        in_specs=[
            pl.BlockSpec((tn, K_IN), lambda i: (i, 0)),        # x row tile
            pl.BlockSpec((K_IN, D_MODEL), lambda i: (0, 0)),   # W, resident
            pl.BlockSpec((tn, D_MODEL), lambda i: (0, 0)),     # pos+bias, resident
        ],
        out_specs=pl.BlockSpec((tn, D_MODEL), lambda i: (i, 0)),
        compiler_params=pltpu.CompilerParams(
            dimension_semantics=("parallel",),
        ),
        cost_estimate=pl.CostEstimate(
            flops=flops, transcendentals=0, bytes_accessed=bytes_accessed
        ),
    )(x, w, posb)

    return out.reshape(bs, N_POS, D_MODEL)


def _reference_f32(pr_mat, w_enc, b_enc, pos_emb):
    """Exact f32 reference of the module semantics."""
    bs = pr_mat.shape[0]
    x = pr_mat.reshape(-1, K_IN)
    z = jnp.dot(x, w_enc, precision=jax.lax.Precision.HIGHEST) + b_enc[None, :]
    z = z.reshape(bs, N_POS, D_MODEL)
    return z + pos_emb[None, :, :]


def _reference_bf16(pr_mat, w_enc, b_enc, pos_emb):
    """Reference fed the same bf16-rounded operands the kernel uses."""
    bs = pr_mat.shape[0]
    x = pr_mat.reshape(-1, K_IN).astype(jnp.bfloat16).astype(jnp.float32)
    w = w_enc.astype(jnp.bfloat16).astype(jnp.float32)
    z = jnp.dot(x, w, precision=jax.lax.Precision.HIGHEST) + b_enc[None, :]
    z = z.reshape(bs, N_POS, D_MODEL)
    return z + pos_emb[None, :, :]


if __name__ == "__main__":
    key = jax.random.PRNGKey(0)
    k_x, k_w, k_b, k_p = jax.random.split(key, 4)

    bs = 2
    pr_mat = jax.random.normal(k_x, (bs, N_POS, D_IN_ROWS, D_IN_COLS), jnp.float32)

    # Deterministic synthetic parameters (shapes implied by the module forward).
    w_enc = jax.random.normal(k_w, (K_IN, D_MODEL), jnp.float32) * 0.02
    b_enc = jax.random.normal(k_b, (D_MODEL,), jnp.float32) * 0.02
    pos_emb = jax.random.normal(k_p, (N_POS, D_MODEL), jnp.float32)  # Embedding(4,256)

    z = acc_external_encoder(pr_mat, w_enc, b_enc, pos_emb)
    z = jax.block_until_ready(z)
    assert z.shape == (bs, N_POS, D_MODEL)

    # Tight check vs a reference fed the same bf16-rounded operands.
    z_ref_q = _reference_bf16(pr_mat, w_enc, b_enc, pos_emb)
    assert jnp.allclose(z, z_ref_q, atol=2e-3, rtol=2e-3), "mismatch vs bf16 reference"

    # Loose check vs the exact f32 module semantics (bf16 quantization error).
    z_ref = _reference_f32(pr_mat, w_enc, b_enc, pos_emb)
    assert jnp.allclose(z, z_ref, atol=5e-2, rtol=5e-2), "mismatch vs f32 reference"

    print("KERNEL_OK")
</pallas_src>

<mosaic_0001>
module attributes {stable_mosaic.version = 11 : i64} {
  func.func @_enc_kernel(%arg0: i32, %arg1: memref<8x4096xbf16, #tpu.memory_space<vmem>>, %arg2: memref<4096x256xbf16, #tpu.memory_space<vmem>>, %arg3: memref<8x256xf32, #tpu.memory_space<vmem>>, %arg4: memref<8x256xf32, #tpu.memory_space<vmem>>) attributes {dimension_semantics = [#tpu.dimension_semantics<parallel>], iteration_bounds = array<i64: 1>, scalar_prefetch = 0 : i64, scratch_operands = 0 : i64, tpu.core_type = #tpu.core_type<tc>, window_params = [{transform_indices = @transform_0, window_bounds = array<i64: 8, 4096>}, {pipeline_mode = #tpu.pipeline_mode<synchronous>, transform_indices = @transform_1, window_bounds = array<i64: 4096, 256>}, {pipeline_mode = #tpu.pipeline_mode<synchronous>, transform_indices = @transform_2, window_bounds = array<i64: 8, 256>}, {transform_indices = @transform_3, window_bounds = array<i64: 8, 256>}]} {
    %c0 = arith.constant 0 : index
    %c0_0 = arith.constant 0 : index
    %0 = vector.load %arg1[%c0, %c0_0] : memref<8x4096xbf16, #tpu.memory_space<vmem>>, vector<8x4096xbf16>
    %c0_1 = arith.constant 0 : index
    %c0_2 = arith.constant 0 : index
    %1 = vector.load %arg2[%c0_1, %c0_2] : memref<4096x256xbf16, #tpu.memory_space<vmem>>, vector<4096x256xbf16>
    %cst = arith.constant dense<0.000000e+00> : vector<8x256xf32>
    %2 = tpu.matmul %0, %1, %cst {dimension_numbers = #tpu.dot_dimension_numbers<[1], [0], [0], [1], [0, 0, 1, 1], [], []>} : vector<8x4096xbf16>, vector<4096x256xbf16>, vector<8x256xf32> -> vector<8x256xf32>
    %c0_3 = arith.constant 0 : index
    %c0_4 = arith.constant 0 : index
    %3 = vector.load %arg3[%c0_3, %c0_4] : memref<8x256xf32, #tpu.memory_space<vmem>>, vector<8x256xf32>
    %4 = arith.addf %2, %3 : vector<8x256xf32>
    %c0_5 = arith.constant 0 : index
    %c0_6 = arith.constant 0 : index
    %5 = vector.load %arg4[%c0_5, %c0_6] : memref<8x256xf32, #tpu.memory_space<vmem>>, vector<8x256xf32>
    tpu.vector_store %arg4[%c0_5, %c0_6], %4 {strides = array<i32>} : memref<8x256xf32, #tpu.memory_space<vmem>>, vector<8x256xf32>,
    return
  }
  func.func @transform_0(%arg0: i32) -> (i32, i32) {
    %c0_i32 = arith.constant 0 : i32
    %c0_i32_0 = arith.constant 0 : i32
    return %arg0, %c0_i32 : i32, i32
  }
  func.func @transform_1(%arg0: i32) -> (i32, i32) {
    %c0_i32 = arith.constant 0 : i32
    %c0_i32_0 = arith.constant 0 : i32
    %c0_i32_1 = arith.constant 0 : i32
    return %c0_i32, %c0_i32_0 : i32, i32
  }
  func.func @transform_2(%arg0: i32) -> (i32, i32) {
    %c0_i32 = arith.constant 0 : i32
    %c0_i32_0 = arith.constant 0 : i32
    %c0_i32_1 = arith.constant 0 : i32
    return %c0_i32, %c0_i32_0 : i32, i32
  }
  func.func @transform_3(%arg0: i32) -> (i32, i32) {
    %c0_i32 = arith.constant 0 : i32
    %c0_i32_0 = arith.constant 0 : i32
    return %arg0, %c0_i32 : i32, i32
  }
}

</mosaic_0001>

<bundles_post_ra>
// kernel: tpu_custom_call.1
= control target key start
LH: loop header
LB: loop body
LE: loop exit
PB: predicated region body
PF: predicated region fallthrough
CT: control target
= control target key end

     0   :  { %8 = vsyncpa [#allocation3], 0  ;;  %s5510_s0 = inlined_call_operand.hbm [shape: bf16[8,4096], index: 0, kind: input, shape index: {}]   ;;  %s5511_s1 = inlined_call_operand.hbm [shape: bf16[4096,256], index: 1, kind: input, shape index: {}]   ;;  %s5512_s2 = inlined_call_operand.hbm [shape: f32[8,256], index: 2, kind: input, shape index: {}]   ;;  %s5513_s3 = inlined_call_operand.hbm [shape: f32[8,256], index: 3, kind: output, shape index: {}]  }
   0x1   :  { %9 = vsyncpa [#allocation6], 0 }
   0x2   :  { %10 = vsyncpa [#allocation4], 0  ;;  %s5364_s12 = smov [#allocation5]  }
   0x3   :  { %s26_s13 = sshll.u32 %s5364_s12, 4  ;;  %s27_s13 = int_to_ptr.vmem [resolvable:$true] %s26_s13 }
   0x4   :  { %s5286_s14 = scalar_lea.vmem %s27_s13, 65536  ;;  %p5291_p1 = scmp.lt.s32.totalorder %s27_s13, %s27_s13 }
   0x5   :  { %p5287_p0 = scmp.ne.s32.totalorder %s27_s13, %s5286_s14  ;;  %p5292_p2 = scmp.lt.s32.totalorder %s5286_s14, %s5286_s14 }
   0x7   :  { %p5293_p3 = por %p5292_p2, %p5291_p1 }
   0x9   :  { %p5294_p4 = pnand %p5293_p3, %p5287_p0 }
   0xb   :  { %5297 = shalt.err (!%p5294_p4)
}
   0xc   :  { %s5365_s15 = smov 128   ;;  %s5366_s16 = smov 8  }
   0xd   :  { %32 = dma.hbm_to_vmem [thread:$0]  %s5511_s1, 65536, %s27_s13, [#allocation6], %s5365_s15, %s5365_s15, %s5366_s16  }
   0xe   :  { %s5367_s19 = smov [#allocation2]   ;;  %s5368_s21 = smov [#allocation7]  }
   0xf   :  { %s17_s20 = sshll.u32 %s5367_s19, 4  ;;  %s39_s22 = sshll.u32 %s5368_s21, 4  ;;  %s18_s20 = int_to_ptr.vmem [resolvable:$true] %s17_s20  ;;  %s40_s22 = int_to_ptr.vmem [resolvable:$true] %s39_s22 }
  0x10   :  { %s5306_s23 = scalar_lea.vmem %s18_s20, 2048  ;;  %p5311_p6 = scmp.lt.s32.totalorder %s18_s20, %s18_s20 }
  0x11   :  { %p5307_p5 = scmp.ne.s32.totalorder %s18_s20, %s5306_s23  ;;  %p5312_p7 = scmp.lt.s32.totalorder %s5306_s23, %s5306_s23 }
  0x13   :  { %p5313_p8 = por %p5312_p7, %p5311_p6 }
  0x15   :  { %p5314_p9 = pnand %p5313_p8, %p5307_p5 }
  0x17   :  { %5317 = shalt.err (!%p5314_p9)
}
  0x18   :  { %20 = dma.hbm_to_vmem [thread:$0]  %s5510_s0, 2048, %s18_s20, [#allocation3]  }
  0x19   :  { %s5326_s26 = scalar_lea.vmem %s40_s22, 256  ;;  %p5331_p11 = scmp.lt.s32.totalorder %s40_s22, %s40_s22 }
  0x1a   :  { %p5327_p10 = scmp.ne.s32.totalorder %s40_s22, %s5326_s26  ;;  %p5332_p12 = scmp.lt.s32.totalorder %s5326_s26, %s5326_s26 }
  0x1c   :  { %p5333_p13 = por %p5332_p12, %p5331_p11 }
  0x1e   :  { %p5334_p0 = pnand %p5333_p13, %p5327_p10 }
  0x20   :  { %5337 = shalt.err (!%p5334_p0)
}
  0x21   :  { %42 = dma.hbm_to_vmem [thread:$0]  %s5512_s2, 256, %s40_s22, [#allocation6]  }
  0x22   :  { %5358 = dma.done.wait [#allocation3], 2048  }
  0x23   :  { %5359 = vsyncadd [#allocation3], 4294965248 }
  0x24   :  { %5360 = dma.done.wait [#allocation6], 65792  }
  0x25   :  { %5361 = vsyncadd [#allocation6], 4294901504  ;;  %v4478_v0 = vld [vmem:[#allocation5 + $0x74] ss:$8 sps:$4 sm:$0xff]   ;;  %v4482_v2 = vld [vmem:[#allocation5 + $0x70] ss:$8 sps:$4 sm:$0xff]  }
  0x26   :  { %v4480_v1 = vld [vmem:[#allocation5 + $0x174] ss:$8 sps:$4 sm:$0xff]   ;;  %3254 = vmatprep.subr.bf16.mxu0 %v4478_v0  ;;  %v4483_v3 = vld [vmem:[#allocation5 + $0x170] ss:$8 sps:$4 sm:$0xff]   ;;  %v4484_v4 = vld [vmem:[#allocation5 + $0x64] ss:$8 sps:$4 sm:$0xff]  }
  0x27   :  { %3295 = vmatprep.subr.bf16.mxu1 %v4480_v1  ;;  %3255 = vmatpush1.bf16.msra.mxu0 %v4482_v2  ;;  %v4486_v5 = vld [vmem:[#allocation5 + $0x164] ss:$8 sps:$4 sm:$0xff]   ;;  %v4488_v6 = vld [vmem:[#allocation5 + $0x60] ss:$8 sps:$4 sm:$0xff]   ;;  %v4490_v8 = vld [vmem:[#allocation5 + $0x54] ss:$8 sps:$4 sm:$0xff]  }
  0x28   :  { %3296 = vmatpush1.bf16.msra.mxu1 %v4483_v3  ;;  %3256 = vmatprep.subr.bf16.mxu0 %v4484_v4  ;;  %v4489_v7 = vld [vmem:[#allocation5 + $0x160] ss:$8 sps:$4 sm:$0xff]   ;;  %v4492_v9 = vld [vmem:[#allocation5 + $0x154] ss:$8 sps:$4 sm:$0xff]   ;;  %v4494_v10 = vld [vmem:[#allocation5 + $0x50] ss:$8 sps:$4 sm:$0xff]  }
  0x29   :  { %3297 = vmatprep.subr.bf16.mxu1 %v4486_v5  ;;  %v4495_v11 = vld [vmem:[#allocation5 + $0x150] ss:$8 sps:$4 sm:$0xff]   ;;  %v4496_v12 = vld [vmem:[#allocation5 + $0x44] ss:$8 sps:$4 sm:$0xff]   ;;  %v4500_v14 = vld [vmem:[#allocation5 + $0x40] ss:$8 sps:$4 sm:$0xff]  }
  0x2a   :  { %v4498_v13 = vld [vmem:[#allocation5 + $0x144] ss:$8 sps:$4 sm:$0xff]   ;;  %v4501_v15 = vld [vmem:[#allocation5 + $0x140] ss:$8 sps:$4 sm:$0xff]   ;;  %v4502_v16 = vld [vmem:[#allocation5 + $0x34] ss:$8 sps:$4 sm:$0xff]  }
  0x2b   :  { %3257 = vmatpush1.bf16.msra.mxu0 %v4488_v6  ;;  %v4504_v17 = vld [vmem:[#allocation5 + $0x134] ss:$8 sps:$4 sm:$0xff]   ;;  %v4506_v18 = vld [vmem:[#allocation5 + $0x30] ss:$8 sps:$4 sm:$0xff]   ;;  %v4508_v20 = vld [vmem:[#allocation5 + $0x24] ss:$8 sps:$4 sm:$0xff]  }
  0x2c   :  { %3298 = vmatpush1.bf16.msra.mxu1 %v4489_v7  ;;  %3258 = vmatprep.subr.bf16.mxu0 %v4490_v8  ;;  %v4507_v19 = vld [vmem:[#allocation5 + $0x130] ss:$8 sps:$4 sm:$0xff]   ;;  %v4510_v21 = vld [vmem:[#allocation5 + $0x124] ss:$8 sps:$4 sm:$0xff]   ;;  %v4512_v22 = vld [vmem:[#allocation5 + $0x20] ss:$8 sps:$4 sm:$0xff]  }
  0x2d   :  { %3299 = vmatprep.subr.bf16.mxu1 %v4492_v9  ;;  %v4513_v23 = vld [vmem:[#allocation5 + $0x120] ss:$8 sps:$4 sm:$0xff]   ;;  %v4514_v24 = vld [vmem:[#allocation5 + $0x14] ss:$8 sps:$4 sm:$0xff]   ;;  %v4518_v26 = vld [vmem:[#allocation5 + $0x10] ss:$8 sps:$4 sm:$0xff]  }
  0x2e   :  { %v4516_v25 = vld [vmem:[#allocation5 + $0x114] ss:$8 sps:$4 sm:$0xff]   ;;  %v4519_v27 = vld [vmem:[#allocation5 + $0x110] ss:$8 sps:$4 sm:$0xff]   ;;  %v4520_v28 = vld [vmem:[#allocation5 + $0x4] ss:$8 sps:$4 sm:$0xff]  }
  0x2f   :  { %3259 = vmatpush1.bf16.msra.mxu0 %v4494_v10  ;;  %v4522_v29 = vld [vmem:[#allocation5 + $0x104] ss:$8 sps:$4 sm:$0xff]   ;;  %v4524_v30 = vld [vmem:[#allocation5] ss:$8 sps:$4 sm:$0xff]   ;;  %v4526_v32 = vld [vmem:[#allocation5 + $0xf4] ss:$8 sps:$4 sm:$0xff]  }
  0x30   :  { %3300 = vmatpush1.bf16.msra.mxu1 %v4495_v11  ;;  %3260 = vmatprep.subr.bf16.mxu0 %v4496_v12  ;;  %v4525_v31 = vld [vmem:[#allocation5 + $0x100] ss:$8 sps:$4 sm:$0xff]   ;;  %v4528_v33 = vld [vmem:[#allocation5 + $0x1f4] ss:$8 sps:$4 sm:$0xff]   ;;  %v4530_v34 = vld [vmem:[#allocation5 + $0xf0] ss:$8 sps:$4 sm:$0xff]  }
  0x31   :  { %3301 = vmatprep.subr.bf16.mxu1 %v4498_v13  ;;  %v4531_v35 = vld [vmem:[#allocation5 + $0x1f0] ss:$8 sps:$4 sm:$0xff]   ;;  %v4532_v36 = vld [vmem:[#allocation5 + $0xe4] ss:$8 sps:$4 sm:$0xff]   ;;  %v4536_v38 = vld [vmem:[#allocation5 + $0xe0] ss:$8 sps:$4 sm:$0xff]  }
  0x32   :  { %v4534_v37 = vld [vmem:[#allocation5 + $0x1e4] ss:$8 sps:$4 sm:$0xff]   ;;  %v4537_v39 = vld [vmem:[#allocation5 + $0x1e0] ss:$8 sps:$4 sm:$0xff]   ;;  %v4538_v40 = vld [vmem:[#allocation5 + $0xd4] ss:$8 sps:$4 sm:$0xff]  }
  0x33   :  { %3261 = vmatpush1.bf16.msra.mxu0 %v4500_v14  ;;  %v4540_v41 = vld [vmem:[#allocation5 + $0x1d4] ss:$8 sps:$4 sm:$0xff]   ;;  %v4542_v42 = vld [vmem:[#allocation5 + $0xd0] ss:$8 sps:$4 sm:$0xff]   ;;  %v4544_v44 = vld [vmem:[#allocation5 + $0xc4] ss:$8 sps:$4 sm:$0xff]  }
  0x34   :  { %3302 = vmatpush1.bf16.msra.mxu1 %v4501_v15  ;;  %3262 = vmatprep.subr.bf16.mxu0 %v4502_v16  ;;  %v4543_v43 = vld [vmem:[#allocation5 + $0x1d0] ss:$8 sps:$4 sm:$0xff]   ;;  %v4546_v45 = vld [vmem:[#allocation5 + $0x1c4] ss:$8 sps:$4 sm:$0xff]   ;;  %v4548_v49 = vld [vmem:[#allocation5 + $0xc0] ss:$8 sps:$4 sm:$0xff]  }
  0x35   :  { %3303 = vmatprep.subr.bf16.mxu1 %v4504_v17  ;;  %v52_v46 = vld [vmem:[#allocation2] sm:$0xff]  ;;  %v53_v48 = vld [vmem:[#allocation2 + $0x8] sm:$0xff]  ;;  %v4550_v52 = vld [vmem:[#allocation5 + $0xb4] ss:$8 sps:$4 sm:$0xff]   ;;  %s5369_s0 = smov [#allocation8]  }
  0x36   :  { %v3929_v47 = vcombine.high %v52_v46, %v52_v46  ;;  %v4549_v50 = vld [vmem:[#allocation5 + $0x1c0] ss:$8 sps:$4 sm:$0xff]   ;;  %v3931_v51 = vcombine.high %v53_v48, %v53_v48  ;;  %v4552_v53 = vld [vmem:[#allocation5 + $0x1b4] ss:$8 sps:$4 sm:$0xff]   ;;  %v4554_v54 = vld [vmem:[#allocation5 + $0xb0] ss:$8 sps:$4 sm:$0xff]   ;;  %v3928_v6 = vcombine.low %v52_v46, %v52_v46  ;;  %v3930_v7 = vcombine.low %v53_v48, %v53_v48 }
  0x37   :  { %3263 = vmatpush1.bf16.msra.mxu0 %v4506_v18  ;;  %v4555_v55 = vld [vmem:[#allocation5 + $0x1b0] ss:$8 sps:$4 sm:$0xff]   ;;  %v4556_v56 = vld [vmem:[#allocation5 + $0xa4] ss:$8 sps:$4 sm:$0xff]   ;;  %v4560_v58 = vld [vmem:[#allocation5 + $0xa0] ss:$8 sps:$4 sm:$0xff]  }
  0x38   :  { %3304 = vmatpush1.bf16.msra.mxu1 %v4507_v19  ;;  %3264 = vmatprep.subr.bf16.mxu0 %v4508_v20  ;;  %v4558_v57 = vld [vmem:[#allocation5 + $0x1a4] ss:$8 sps:$4 sm:$0xff]   ;;  %v4561_v59 = vld [vmem:[#allocation5 + $0x1a0] ss:$8 sps:$4 sm:$0xff]   ;;  %v4562_v60 = vld [vmem:[#allocation5 + $0x94] ss:$8 sps:$4 sm:$0xff]  }
  0x39   :  { %3305 = vmatprep.subr.bf16.mxu1 %v4510_v21  ;;  %3286 = vmatprep.mubr.bf16.mxu0 %v3929_v47  ;;  %v4564_v61 = vld [vmem:[#allocation5 + $0x194] ss:$8 sps:$4 sm:$0xff]   ;;  %v4566_v62 = vld [vmem:[#allocation5 + $0x90] ss:$8 sps:$4 sm:$0xff]   ;;  %v4568_v0 = vld [vmem:[#allocation5 + $0x84] ss:$8 sps:$4 sm:$0xff]  }
  0x3a   :  { %3327 = vmatprep.mubr.bf16.mxu1 %v3931_v51  ;;  %v4567_v63 = vld [vmem:[#allocation5 + $0x190] ss:$8 sps:$4 sm:$0xff]   ;;  %v4570_v1 = vld [vmem:[#allocation5 + $0x184] ss:$8 sps:$4 sm:$0xff]   ;;  %v4572_v2 = vld [vmem:[#allocation5 + $0x80] ss:$8 sps:$4 sm:$0xff]  }
  0x3b   :  { %3265 = vmatpush1.bf16.msra.mxu0 %v4512_v22  ;;  %v4573_v3 = vld [vmem:[#allocation5 + $0x180] ss:$8 sps:$4 sm:$0xff]   ;;  %v4580_v4 = vld [vmem:[#allocation5 + $0x274] ss:$8 sps:$4 sm:$0xff]   ;;  %v4578_v8 = vld [vmem:[#allocation5 + $0x270] ss:$8 sps:$4 sm:$0xff]  }
  0x3c   :  { %3306 = vmatpush1.bf16.msra.mxu1 %v4513_v23  ;;  %3266 = vmatprep.subr.bf16.mxu0 %v4514_v24  ;;  %v4583_v5 = vld [vmem:[#allocation5 + $0x374] ss:$8 sps:$4 sm:$0xff]   ;;  %v4581_v9 = vld [vmem:[#allocation5 + $0x370] ss:$8 sps:$4 sm:$0xff]   ;;  %v4586_v10 = vld [vmem:[#allocation5 + $0x264] ss:$8 sps:$4 sm:$0xff]  }
  0x3d   :  { %3307 = vmatprep.subr.bf16.mxu1 %v4516_v25  ;;  %v4589_v11 = vld [vmem:[#allocation5 + $0x364] ss:$8 sps:$4 sm:$0xff]   ;;  %v4584_v12 = vld [vmem:[#allocation5 + $0x260] ss:$8 sps:$4 sm:$0xff]   ;;  %v4592_v14 = vld [vmem:[#allocation5 + $0x254] ss:$8 sps:$4 sm:$0xff]  }
  0x3e   :  { %v4587_v13 = vld [vmem:[#allocation5 + $0x360] ss:$8 sps:$4 sm:$0xff]   ;;  %v4595_v15 = vld [vmem:[#allocation5 + $0x354] ss:$8 sps:$4 sm:$0xff]   ;;  %v4590_v16 = vld [vmem:[#allocation5 + $0x250] ss:$8 sps:$4 sm:$0xff]  }
  0x3f   :  { %3267 = vmatpush1.bf16.msra.mxu0 %v4518_v26  ;;  %v4593_v17 = vld [vmem:[#allocation5 + $0x350] ss:$8 sps:$4 sm:$0xff]   ;;  %v4598_v18 = vld [vmem:[#allocation5 + $0x244] ss:$8 sps:$4 sm:$0xff]   ;;  %v4596_v20 = vld [vmem:[#allocation5 + $0x240] ss:$8 sps:$4 sm:$0xff]  }
  0x40   :  { %3308 = vmatpush1.bf16.msra.mxu1 %v4519_v27  ;;  %3268 = vmatprep.subr.bf16.mxu0 %v4520_v28  ;;  %v4601_v19 = vld [vmem:[#allocation5 + $0x344] ss:$8 sps:$4 sm:$0xff]   ;;  %v4599_v21 = vld [vmem:[#allocation5 + $0x340] ss:$8 sps:$4 sm:$0xff]   ;;  %v4604_v22 = vld [vmem:[#allocation5 + $0x234] ss:$8 sps:$4 sm:$0xff]  }
  0x41   :  { %3309 = vmatprep.subr.bf16.mxu1 %v4522_v29  ;;  %v4607_v23 = vld [vmem:[#allocation5 + $0x334] ss:$8 sps:$4 sm:$0xff]   ;;  %v4602_v24 = vld [vmem:[#allocation5 + $0x230] ss:$8 sps:$4 sm:$0xff]   ;;  %v4610_v26 = vld [vmem:[#allocation5 + $0x224] ss:$8 sps:$4 sm:$0xff]  }
  0x42   :  { %v4605_v25 = vld [vmem:[#allocation5 + $0x330] ss:$8 sps:$4 sm:$0xff]   ;;  %v4613_v27 = vld [vmem:[#allocation5 + $0x324] ss:$8 sps:$4 sm:$0xff]   ;;  %v4608_v28 = vld [vmem:[#allocation5 + $0x220] ss:$8 sps:$4 sm:$0xff]  }
  0x43   :  { %3269 = vmatpush1.bf16.msra.mxu0 %v4524_v30  ;;  %v4611_v29 = vld [vmem:[#allocation5 + $0x320] ss:$8 sps:$4 sm:$0xff]   ;;  %v4616_v30 = vld [vmem:[#allocation5 + $0x214] ss:$8 sps:$4 sm:$0xff]   ;;  %v4634_v46 = vld [vmem:[#allocation5 + $0x2e4] ss:$8 sps:$4 sm:$0xff]  }
  0x44   :  { %3310 = vmatpush1.bf16.msra.mxu1 %v4525_v31  ;;  %3270 = vmatprep.subr.bf16.mxu0 %v4526_v32  ;;  %v4619_v31 = vld [vmem:[#allocation5 + $0x314] ss:$8 sps:$4 sm:$0xff]   ;;  %v4637_v47 = vld [vmem:[#allocation5 + $0x3e4] ss:$8 sps:$4 sm:$0xff]   ;;  %v4632_v48 = vld [vmem:[#allocation5 + $0x2e0] ss:$8 sps:$4 sm:$0xff]  }
  0x45   :  { %3311 = vmatprep.subr.bf16.mxu1 %v4528_v33  ;;  %v5399_v32 = vld [vmem:[#allocation2 + $0x10] sm:$0xff]  ;;  %v5401_v33 = vld [vmem:[#allocation2 + $0x18] sm:$0xff]  ;;  %s3918_s2 = sshll.u32 %s5369_s0, 4  ;;  %s3919_s2 = int_to_ptr.vmem [resolvable:$true] %s3918_s2 }
  0x46   :  { %v4643_v51 = vld [vmem:[#allocation5 + $0x3d4] ss:$8 sps:$4 sm:$0xff]   ;;  %s5338_s28 = scalar_lea.vmem %s3919_s2, 256  ;;  %p5343_p2 = scmp.lt.s32.totalorder %s3919_s2, %s3919_s2 }
  0x47   :  { %3271 = vmatpush2.bf16.msra.mxu0 %v4530_v34  ;;  %v4614_v34 = vld [vmem:[#allocation5 + $0x210] ss:$8 sps:$4 sm:$0xff]   ;;  %p5339_p1 = scmp.ne.s32.totalorder %s3919_s2, %s5338_s28  ;;  %p5344_p3 = scmp.lt.s32.totalorder %s5338_s28, %s5338_s28 }
  0x48   :  { %3312 = vmatpush2.bf16.msra.mxu1 %v4531_v35  ;;  %3272 = vmatprep.subr.bf16.mxu0 %v4532_v36  ;;  %v4617_v35 = vld [vmem:[#allocation5 + $0x310] ss:$8 sps:$4 sm:$0xff]   ;;  %v3933_v36 = vcombine.high %v5399_v32, %v5399_v32 }
  0x49   :  { %3313 = vmatprep.subr.bf16.mxu1 %v4534_v37  ;;  %v3935_v37 = vcombine.high %v5401_v33, %v5401_v33  ;;  %p5345_p4 = por %p5344_p3, %p5343_p2 }
  0x4b   :  { %3273 = vmatpush2.bf16.msra.mxu0 %v4536_v38  ;;  %v4622_v38 = vld [vmem:[#allocation5 + $0x204] ss:$8 sps:$4 sm:$0xff]   ;;  %p5346_p5 = pnand %p5345_p4, %p5339_p1 }
  0x4c   :  { %3314 = vmatpush2.bf16.msra.mxu1 %v4537_v39  ;;  %3274 = vmatprep.subr.bf16.mxu0 %v4538_v40  ;;  %v4625_v39 = vld [vmem:[#allocation5 + $0x304] ss:$8 sps:$4 sm:$0xff]   ;;  %v4620_v40 = vld [vmem:[#allocation5 + $0x200] ss:$8 sps:$4 sm:$0xff]  }
  0x4d   :  { %3315 = vmatprep.subr.bf16.mxu1 %v4540_v41  ;;  %v4623_v41 = vld [vmem:[#allocation5 + $0x300] ss:$8 sps:$4 sm:$0xff]  }
  0x4f   :  { %3275 = vmatpush2.bf16.msra.mxu0 %v4542_v42  ;;  %v4628_v42 = vld [vmem:[#allocation5 + $0x2f4] ss:$8 sps:$4 sm:$0xff]  }
  0x50   :  { %3316 = vmatpush2.bf16.msra.mxu1 %v4543_v43  ;;  %3276 = vmatprep.subr.bf16.mxu0 %v4544_v44  ;;  %v4631_v43 = vld [vmem:[#allocation5 + $0x3f4] ss:$8 sps:$4 sm:$0xff]   ;;  %v4626_v44 = vld [vmem:[#allocation5 + $0x2f0] ss:$8 sps:$4 sm:$0xff]  }
  0x51   :  { %3317 = vmatprep.subr.bf16.mxu1 %v4546_v45  ;;  %v4629_v45 = vld [vmem:[#allocation5 + $0x3f0] ss:$8 sps:$4 sm:$0xff]  }
  0x53   :  { %3277 = vmatpush2.bf16.msra.mxu0 %v4548_v49  ;;  %v4635_v49 = vld [vmem:[#allocation5 + $0x3e0] ss:$8 sps:$4 sm:$0xff]  }
  0x54   :  { %3318 = vmatpush2.bf16.msra.mxu1 %v4549_v50  ;;  %3278 = vmatprep.subr.bf16.mxu0 %v4550_v52  ;;  %v4640_v50 = vld [vmem:[#allocation5 + $0x2d4] ss:$8 sps:$4 sm:$0xff]   ;;  %v4638_v52 = vld [vmem:[#allocation5 + $0x2d0] ss:$8 sps:$4 sm:$0xff]  }
  0x55   :  { %3319 = vmatprep.subr.bf16.mxu1 %v4552_v53  ;;  %v4641_v53 = vld [vmem:[#allocation5 + $0x3d0] ss:$8 sps:$4 sm:$0xff]  }
  0x57   :  { %3279 = vmatpush2.bf16.msra.mxu0 %v4554_v54  ;;  %v4646_v54 = vld [vmem:[#allocation5 + $0x2c4] ss:$8 sps:$4 sm:$0xff]  }
  0x58   :  { %3320 = vmatpush2.bf16.msra.mxu1 %v4555_v55  ;;  %3280 = vmatprep.subr.bf16.mxu0 %v4556_v56  ;;  %v4649_v55 = vld [vmem:[#allocation5 + $0x3c4] ss:$8 sps:$4 sm:$0xff]   ;;  %v4644_v56 = vld [vmem:[#allocation5 + $0x2c0] ss:$8 sps:$4 sm:$0xff]  }
  0x59   :  { %3321 = vmatprep.subr.bf16.mxu1 %v4558_v57  ;;  %v4647_v57 = vld [vmem:[#allocation5 + $0x3c0] ss:$8 sps:$4 sm:$0xff]  }
  0x5b   :  { %3281 = vmatpush2.bf16.msra.mxu0 %v4560_v58  ;;  %v4652_v58 = vld [vmem:[#allocation5 + $0x2b4] ss:$8 sps:$4 sm:$0xff]  }
  0x5c   :  { %3322 = vmatpush2.bf16.msra.mxu1 %v4561_v59  ;;  %3282 = vmatprep.subr.bf16.mxu0 %v4562_v60  ;;  %v4655_v59 = vld [vmem:[#allocation5 + $0x3b4] ss:$8 sps:$4 sm:$0xff]   ;;  %v4650_v60 = vld [vmem:[#allocation5 + $0x2b0] ss:$8 sps:$4 sm:$0xff]  }
  0x5d   :  { %3323 = vmatprep.subr.bf16.mxu1 %v4564_v61  ;;  %v4653_v61 = vld [vmem:[#allocation5 + $0x3b0] ss:$8 sps:$4 sm:$0xff]  }
  0x5f   :  { %3283 = vmatpush2.bf16.msra.mxu0 %v4566_v62  ;;  %v4658_v62 = vld [vmem:[#allocation5 + $0x2a4] ss:$8 sps:$4 sm:$0xff]  }
  0x60   :  { %3324 = vmatpush2.bf16.msra.mxu1 %v4567_v63  ;;  %3284 = vmatprep.subr.bf16.mxu0 %v4568_v0  ;;  %v4661_v63 = vld [vmem:[#allocation5 + $0x3a4] ss:$8 sps:$4 sm:$0xff]   ;;  %v4656_v0 = vld [vmem:[#allocation5 + $0x2a0] ss:$8 sps:$4 sm:$0xff]  }
  0x61   :  { %3325 = vmatprep.subr.bf16.mxu1 %v4570_v1  ;;  %v4659_v1 = vld [vmem:[#allocation5 + $0x3a0] ss:$8 sps:$4 sm:$0xff]  }
  0x63   :  { %3285 = vmatpush2.bf16.msra.mxu0 %v4572_v2  ;;  %v4664_v2 = vld [vmem:[#allocation5 + $0x294] ss:$8 sps:$4 sm:$0xff]  }
  0x64   :  { %3326 = vmatpush2.bf16.msra.mxu1 %v4573_v3  ;;  %3336 = vmatprep.subr.bf16.mxu0 %v4580_v4  ;;  %v4667_v3 = vld [vmem:[#allocation5 + $0x394] ss:$8 sps:$4 sm:$0xff]   ;;  %v4662_v4 = vld [vmem:[#allocation5 + $0x290] ss:$8 sps:$4 sm:$0xff]  }
  0x65   :  { %3377 = vmatprep.subr.bf16.mxu1 %v4583_v5  ;;  %v4665_v5 = vld [vmem:[#allocation5 + $0x390] ss:$8 sps:$4 sm:$0xff]  }
  0x66   :  { %3287 = vmatmul.mubr.bf16.vlgmr.msra.gmra.mxu0 %v3928_v6  ;;  %v4670_v6 = vld [vmem:[#allocation5 + $0x284] ss:$8 sps:$4 sm:$0xff]  }
  0x67   :  { %3328 = vmatmul.mubr.bf16.vlgmr.msra.gmra.mxu1 %v3930_v7  ;;  %3337 = vmatpush1.bf16.msra.mxu0 %v4578_v8  ;;  %v4673_v7 = vld [vmem:[#allocation5 + $0x384] ss:$8 sps:$4 sm:$0xff]   ;;  %v4668_v8 = vld [vmem:[#allocation5 + $0x280] ss:$8 sps:$4 sm:$0xff]  }
  0x68   :  { %3378 = vmatpush1.bf16.msra.mxu1 %v4581_v9  ;;  %3338 = vmatprep.subr.bf16.mxu0 %v4586_v10  ;;  %v4671_v9 = vld [vmem:[#allocation5 + $0x380] ss:$8 sps:$4 sm:$0xff]   ;;  %v4680_v10 = vld [vmem:[#allocation5 + $0x474] ss:$8 sps:$4 sm:$0xff]  }
  0x69   :  { %3379 = vmatprep.subr.bf16.mxu1 %v4589_v11  ;;  %3368 = vmatprep.mubr.bf16.mxu0 %v3933_v36  ;;  %v4683_v11 = vld [vmem:[#allocation5 + $0x574] ss:$8 sps:$4 sm:$0xff]   ;;  %v4710_v36 = vld [vmem:[#allocation5 + $0x424] ss:$8 sps:$4 sm:$0xff]  }
  0x6a   :  { %3409 = vmatprep.mubr.bf16.mxu1 %v3935_v37  ;;  %v4713_v37 = vld [vmem:[#allocation5 + $0x524] ss:$8 sps:$4 sm:$0xff]  }
  0x6b   :  { %3339 = vmatpush1.bf16.msra.mxu0 %v4584_v12  ;;  %v3932_v12 = vcombine.low %v5399_v32, %v5399_v32  ;;  %v4704_v32 = vld [vmem:[#allocation5 + $0x434] ss:$8 sps:$4 sm:$0xff]  }
  0x6c   :  { %3380 = vmatpush1.bf16.msra.mxu1 %v4587_v13  ;;  %3340 = vmatprep.subr.bf16.mxu0 %v4592_v14  ;;  %v3934_v13 = vcombine.low %v5401_v33, %v5401_v33  ;;  %v4678_v14 = vld [vmem:[#allocation5 + $0x470] ss:$8 sps:$4 sm:$0xff]   ;;  %v4707_v33 = vld [vmem:[#allocation5 + $0x534] ss:$8 sps:$4 sm:$0xff]  }
  0x6d   :  { %3381 = vmatprep.subr.bf16.mxu1 %v4595_v15  ;;  %v4681_v15 = vld [vmem:[#allocation5 + $0x570] ss:$8 sps:$4 sm:$0xff]  }
  0x6f   :  { %3341 = vmatpush1.bf16.msra.mxu0 %v4590_v16  ;;  %v4686_v16 = vld [vmem:[#allocation5 + $0x464] ss:$8 sps:$4 sm:$0xff]  }
  0x70   :  { %3382 = vmatpush1.bf16.msra.mxu1 %v4593_v17  ;;  %3342 = vmatprep.subr.bf16.mxu0 %v4598_v18  ;;  %v4689_v17 = vld [vmem:[#allocation5 + $0x564] ss:$8 sps:$4 sm:$0xff]  }
  0x71   :  { %3383 = vmatprep.subr.bf16.mxu1 %v4601_v19  ;;  %v5411_v18 = vld [vmem:[#allocation2 + $0x20] sm:$0xff]  ;;  %v5413_v19 = vld [vmem:[#allocation2 + $0x28] sm:$0xff] }
  0x73   :  { %3343 = vmatpush1.bf16.msra.mxu0 %v4596_v20  ;;  %v3937_v20 = vcombine.high %v5411_v18, %v5411_v18 }
  0x74   :  { %3384 = vmatpush1.bf16.msra.mxu1 %v4599_v21  ;;  %3344 = vmatprep.subr.bf16.mxu0 %v4604_v22  ;;  %v3939_v21 = vcombine.high %v5413_v19, %v5413_v19  ;;  %v4684_v22 = vld [vmem:[#allocation5 + $0x460] ss:$8 sps:$4 sm:$0xff]  }
  0x75   :  { %3385 = vmatprep.subr.bf16.mxu1 %v4607_v23  ;;  %v4687_v23 = vld [vmem:[#allocation5 + $0x560] ss:$8 sps:$4 sm:$0xff]  }
  0x77   :  { %3345 = vmatpush1.bf16.msra.mxu0 %v4602_v24  ;;  %v4692_v24 = vld [vmem:[#allocation5 + $0x454] ss:$8 sps:$4 sm:$0xff]  }
  0x78   :  { %3386 = vmatpush1.bf16.msra.mxu1 %v4605_v25  ;;  %3346 = vmatprep.subr.bf16.mxu0 %v4610_v26  ;;  %v4695_v25 = vld [vmem:[#allocation5 + $0x554] ss:$8 sps:$4 sm:$0xff]   ;;  %v4690_v26 = vld [vmem:[#allocation5 + $0x450] ss:$8 sps:$4 sm:$0xff]  }
  0x79   :  { %3387 = vmatprep.subr.bf16.mxu1 %v4613_v27  ;;  %v4693_v27 = vld [vmem:[#allocation5 + $0x550] ss:$8 sps:$4 sm:$0xff]  }
  0x7b   :  { %3347 = vmatpush1.bf16.msra.mxu0 %v4608_v28  ;;  %v4698_v28 = vld [vmem:[#allocation5 + $0x444] ss:$8 sps:$4 sm:$0xff]  }
  0x7c   :  { %3388 = vmatpush1.bf16.msra.mxu1 %v4611_v29  ;;  %3348 = vmatprep.subr.bf16.mxu0 %v4616_v30  ;;  %v4701_v29 = vld [vmem:[#allocation5 + $0x544] ss:$8 sps:$4 sm:$0xff]   ;;  %v4696_v30 = vld [vmem:[#allocation5 + $0x440] ss:$8 sps:$4 sm:$0xff]  }
  0x7d   :  { %3389 = vmatprep.subr.bf16.mxu1 %v4619_v31  ;;  %v4699_v31 = vld [vmem:[#allocation5 + $0x540] ss:$8 sps:$4 sm:$0xff]  }
  0x7f   :  { %3349 = vmatpush1.bf16.msra.mxu0 %v4614_v34  ;;  %v4702_v34 = vld [vmem:[#allocation5 + $0x430] ss:$8 sps:$4 sm:$0xff]  }
  0x80   :  { %3390 = vmatpush1.bf16.msra.mxu1 %v4617_v35  ;;  %3350 = vmatprep.subr.bf16.mxu0 %v4622_v38  ;;  %v4705_v35 = vld [vmem:[#allocation5 + $0x530] ss:$8 sps:$4 sm:$0xff]   ;;  %v4708_v38 = vld [vmem:[#allocation5 + $0x420] ss:$8 sps:$4 sm:$0xff]  }
  0x81   :  { %3391 = vmatprep.subr.bf16.mxu1 %v4625_v39  ;;  %v4711_v39 = vld [vmem:[#allocation5 + $0x520] ss:$8 sps:$4 sm:$0xff]  }
  0x83   :  { %3351 = vmatpush1.bf16.msra.mxu0 %v4620_v40  ;;  %v4716_v40 = vld [vmem:[#allocation5 + $0x414] ss:$8 sps:$4 sm:$0xff]  }
  0x84   :  { %3392 = vmatpush1.bf16.msra.mxu1 %v4623_v41  ;;  %3352 = vmatprep.subr.bf16.mxu0 %v4628_v42  ;;  %v4719_v41 = vld [vmem:[#allocation5 + $0x514] ss:$8 sps:$4 sm:$0xff]   ;;  %v4714_v42 = vld [vmem:[#allocation5 + $0x410] ss:$8 sps:$4 sm:$0xff]  }
  0x85   :  { %3393 = vmatprep.subr.bf16.mxu1 %v4631_v43  ;;  %v4717_v43 = vld [vmem:[#allocation5 + $0x510] ss:$8 sps:$4 sm:$0xff]  }
  0x87   :  { %3353 = vmatpush2.bf16.msra.mxu0 %v4626_v44  ;;  %v4722_v44 = vld [vmem:[#allocation5 + $0x404] ss:$8 sps:$4 sm:$0xff]  }
  0x88   :  { %3394 = vmatpush2.bf16.msra.mxu1 %v4629_v45  ;;  %3354 = vmatprep.subr.bf16.mxu0 %v4634_v46  ;;  %v4725_v45 = vld [vmem:[#allocation5 + $0x504] ss:$8 sps:$4 sm:$0xff]   ;;  %v4720_v46 = vld [vmem:[#allocation5 + $0x400] ss:$8 sps:$4 sm:$0xff]  }
  0x89   :  { %3395 = vmatprep.subr.bf16.mxu1 %v4637_v47  ;;  %v4723_v47 = vld [vmem:[#allocation5 + $0x500] ss:$8 sps:$4 sm:$0xff]  }
  0x8b   :  { %3355 = vmatpush2.bf16.msra.mxu0 %v4632_v48  ;;  %v4728_v48 = vld [vmem:[#allocation5 + $0x4f4] ss:$8 sps:$4 sm:$0xff]  }
  0x8c   :  { %3396 = vmatpush2.bf16.msra.mxu1 %v4635_v49  ;;  %3356 = vmatprep.subr.bf16.mxu0 %v4640_v50  ;;  %v4731_v49 = vld [vmem:[#allocation5 + $0x5f4] ss:$8 sps:$4 sm:$0xff]   ;;  %v4726_v50 = vld [vmem:[#allocation5 + $0x4f0] ss:$8 sps:$4 sm:$0xff]  }
  0x8d   :  { %3397 = vmatprep.subr.bf16.mxu1 %v4643_v51  ;;  %v4729_v51 = vld [vmem:[#allocation5 + $0x5f0] ss:$8 sps:$4 sm:$0xff]  }
  0x8f   :  { %3357 = vmatpush2.bf16.msra.mxu0 %v4638_v52  ;;  %v4734_v52 = vld [vmem:[#allocation5 + $0x4e4] ss:$8 sps:$4 sm:$0xff]  }
  0x90   :  { %3398 = vmatpush2.bf16.msra.mxu1 %v4641_v53  ;;  %3358 = vmatprep.subr.bf16.mxu0 %v4646_v54  ;;  %v4737_v53 = vld [vmem:[#allocation5 + $0x5e4] ss:$8 sps:$4 sm:$0xff]   ;;  %v4732_v54 = vld [vmem:[#allocation5 + $0x4e0] ss:$8 sps:$4 sm:$0xff]  }
  0x91   :  { %3399 = vmatprep.subr.bf16.mxu1 %v4649_v55  ;;  %v4735_v55 = vld [vmem:[#allocation5 + $0x5e0] ss:$8 sps:$4 sm:$0xff]  }
  0x93   :  { %3359 = vmatpush2.bf16.msra.mxu0 %v4644_v56  ;;  %v4740_v56 = vld [vmem:[#allocation5 + $0x4d4] ss:$8 sps:$4 sm:$0xff]  }
  0x94   :  { %3400 = vmatpush2.bf16.msra.mxu1 %v4647_v57  ;;  %3360 = vmatprep.subr.bf16.mxu0 %v4652_v58  ;;  %v4743_v57 = vld [vmem:[#allocation5 + $0x5d4] ss:$8 sps:$4 sm:$0xff]   ;;  %v4738_v58 = vld [vmem:[#allocation5 + $0x4d0] ss:$8 sps:$4 sm:$0xff]  }
  0x95   :  { %3401 = vmatprep.subr.bf16.mxu1 %v4655_v59  ;;  %v4741_v59 = vld [vmem:[#allocation5 + $0x5d0] ss:$8 sps:$4 sm:$0xff]  }
  0x97   :  { %3361 = vmatpush2.bf16.msra.mxu0 %v4650_v60  ;;  %v4746_v60 = vld [vmem:[#allocation5 + $0x4c4] ss:$8 sps:$4 sm:$0xff]  }
  0x98   :  { %3402 = vmatpush2.bf16.msra.mxu1 %v4653_v61  ;;  %3362 = vmatprep.subr.bf16.mxu0 %v4658_v62  ;;  %v4749_v61 = vld [vmem:[#allocation5 + $0x5c4] ss:$8 sps:$4 sm:$0xff]   ;;  %v4744_v62 = vld [vmem:[#allocation5 + $0x4c0] ss:$8 sps:$4 sm:$0xff]  }
  0x99   :  { %3403 = vmatprep.subr.bf16.mxu1 %v4661_v63  ;;  %v4747_v63 = vld [vmem:[#allocation5 + $0x5c0] ss:$8 sps:$4 sm:$0xff]  }
  0x9b   :  { %3363 = vmatpush2.bf16.msra.mxu0 %v4656_v0  ;;  %v4752_v0 = vld [vmem:[#allocation5 + $0x4b4] ss:$8 sps:$4 sm:$0xff]  }
  0x9c   :  { %3404 = vmatpush2.bf16.msra.mxu1 %v4659_v1  ;;  %3364 = vmatprep.subr.bf16.mxu0 %v4664_v2  ;;  %v4755_v1 = vld [vmem:[#allocation5 + $0x5b4] ss:$8 sps:$4 sm:$0xff]   ;;  %v4750_v2 = vld [vmem:[#allocation5 + $0x4b0] ss:$8 sps:$4 sm:$0xff]  }
  0x9d   :  { %3405 = vmatprep.subr.bf16.mxu1 %v4667_v3  ;;  %v4753_v3 = vld [vmem:[#allocation5 + $0x5b0] ss:$8 sps:$4 sm:$0xff]  }
  0x9f   :  { %3365 = vmatpush2.bf16.msra.mxu0 %v4662_v4  ;;  %v4758_v4 = vld [vmem:[#allocation5 + $0x4a4] ss:$8 sps:$4 sm:$0xff]  }
  0xa0   :  { %3406 = vmatpush2.bf16.msra.mxu1 %v4665_v5  ;;  %3366 = vmatprep.subr.bf16.mxu0 %v4670_v6  ;;  %v4761_v5 = vld [vmem:[#allocation5 + $0x5a4] ss:$8 sps:$4 sm:$0xff]   ;;  %v4756_v6 = vld [vmem:[#allocation5 + $0x4a0] ss:$8 sps:$4 sm:$0xff]  }
  0xa1   :  { %3407 = vmatprep.subr.bf16.mxu1 %v4673_v7  ;;  %v4759_v7 = vld [vmem:[#allocation5 + $0x5a0] ss:$8 sps:$4 sm:$0xff]  }
  0xa3   :  { %3367 = vmatpush2.bf16.msra.mxu0 %v4668_v8  ;;  %v4764_v8 = vld [vmem:[#allocation5 + $0x494] ss:$8 sps:$4 sm:$0xff]  }
  0xa4   :  { %3408 = vmatpush2.bf16.msra.mxu1 %v4671_v9  ;;  %3418 = vmatprep.subr.bf16.mxu0 %v4680_v10  ;;  %v4767_v9 = vld [vmem:[#allocation5 + $0x594] ss:$8 sps:$4 sm:$0xff]   ;;  %v4762_v10 = vld [vmem:[#allocation5 + $0x490] ss:$8 sps:$4 sm:$0xff]  }
  0xa5   :  { %3459 = vmatprep.subr.bf16.mxu1 %v4683_v11  ;;  %v4765_v11 = vld [vmem:[#allocation5 + $0x590] ss:$8 sps:$4 sm:$0xff]  }
  0xa6   :  { %3369 = vmatmul.mubr.bf16.vlgmr.msra.gmra.mxu0 %v3932_v12  ;;  %v4770_v12 = vld [vmem:[#allocation5 + $0x484] ss:$8 sps:$4 sm:$0xff]  }
  0xa7   :  { %3410 = vmatmul.mubr.bf16.vlgmr.msra.gmra.mxu1 %v3934_v13  ;;  %3419 = vmatpush1.bf16.msra.mxu0 %v4678_v14  ;;  %v4773_v13 = vld [vmem:[#allocation5 + $0x584] ss:$8 sps:$4 sm:$0xff]   ;;  %v4768_v14 = vld [vmem:[#allocation5 + $0x480] ss:$8 sps:$4 sm:$0xff]  }
  0xa8   :  { %3460 = vmatpush1.bf16.msra.mxu1 %v4681_v15  ;;  %3420 = vmatprep.subr.bf16.mxu0 %v4686_v16  ;;  %v4771_v15 = vld [vmem:[#allocation5 + $0x580] ss:$8 sps:$4 sm:$0xff]   ;;  %v4780_v16 = vld [vmem:[#allocation5 + $0x674] ss:$8 sps:$4 sm:$0xff]  }
  0xa9   :  { %3461 = vmatprep.subr.bf16.mxu1 %v4689_v17  ;;  %3450 = vmatprep.mubr.bf16.mxu0 %v3937_v20  ;;  %v4783_v17 = vld [vmem:[#allocation5 + $0x774] ss:$8 sps:$4 sm:$0xff]  }
  0xaa   :  { %3491 = vmatprep.mubr.bf16.mxu1 %v3939_v21  ;;  %v5419_v20 = vld [vmem:[#allocation2 + $0x30] sm:$0xff]  ;;  %v3936_v21 = vcombine.low %v5411_v18, %v5411_v18  ;;  %v4784_v18 = vld [vmem:[#allocation5 + $0x660] ss:$8 sps:$4 sm:$0xff]  }
  0xab   :  { %3421 = vmatpush1.bf16.msra.mxu0 %v4684_v22  ;;  %v3938_v22 = vcombine.low %v5413_v19, %v5413_v19  ;;  %v4787_v19 = vld [vmem:[#allocation5 + $0x760] ss:$8 sps:$4 sm:$0xff]  }
  0xac   :  { %3462 = vmatpush1.bf16.msra.mxu1 %v4687_v23  ;;  %3422 = vmatprep.subr.bf16.mxu0 %v4692_v24  ;;  %v5425_v23 = vld [vmem:[#allocation2 + $0x38] sm:$0xff] }
  0xad   :  { %3463 = vmatprep.subr.bf16.mxu1 %v4695_v25  ;;  %v4778_v24 = vld [vmem:[#allocation5 + $0x670] ss:$8 sps:$4 sm:$0xff]  }
  0xae   :  { %v4781_v25 = vld [vmem:[#allocation5 + $0x770] ss:$8 sps:$4 sm:$0xff]  }
  0xaf   :  { %3423 = vmatpush1.bf16.msra.mxu0 %v4690_v26  ;;  %v4786_v26 = vld [vmem:[#allocation5 + $0x664] ss:$8 sps:$4 sm:$0xff]  }
  0xb0   :  { %3464 = vmatpush1.bf16.msra.mxu1 %v4693_v27  ;;  %3424 = vmatprep.subr.bf16.mxu0 %v4698_v28  ;;  %v4789_v27 = vld [vmem:[#allocation5 + $0x764] ss:$8 sps:$4 sm:$0xff]   ;;  %v3941_v28 = vcombine.high %v5419_v20, %v5419_v20 }
  0xb1   :  { %3465 = vmatprep.subr.bf16.mxu1 %v4701_v29  ;;  %v3943_v29 = vcombine.high %v5425_v23, %v5425_v23 }
  0xb3   :  { %3425 = vmatpush1.bf16.msra.mxu0 %v4696_v30  ;;  %v4792_v30 = vld [vmem:[#allocation5 + $0x654] ss:$8 sps:$4 sm:$0xff]  }
  0xb4   :  { %3466 = vmatpush1.bf16.msra.mxu1 %v4699_v31  ;;  %3426 = vmatprep.subr.bf16.mxu0 %v4704_v32  ;;  %v4795_v31 = vld [vmem:[#allocation5 + $0x754] ss:$8 sps:$4 sm:$0xff]   ;;  %v4790_v32 = vld [vmem:[#allocation5 + $0x650] ss:$8 sps:$4 sm:$0xff]  }
  0xb5   :  { %3467 = vmatprep.subr.bf16.mxu1 %v4707_v33  ;;  %v4793_v33 = vld [vmem:[#allocation5 + $0x750] ss:$8 sps:$4 sm:$0xff]  }
  0xb7   :  { %3427 = vmatpush1.bf16.msra.mxu0 %v4702_v34  ;;  %v4798_v34 = vld [vmem:[#allocation5 + $0x644] ss:$8 sps:$4 sm:$0xff]  }
  0xb8   :  { %3468 = vmatpush1.bf16.msra.mxu1 %v4705_v35  ;;  %3428 = vmatprep.subr.bf16.mxu0 %v4710_v36  ;;  %v4801_v35 = vld [vmem:[#allocation5 + $0x744] ss:$8 sps:$4 sm:$0xff]   ;;  %v4796_v36 = vld [vmem:[#allocation5 + $0x640] ss:$8 sps:$4 sm:$0xff]  }
  0xb9   :  { %3469 = vmatprep.subr.bf16.mxu1 %v4713_v37  ;;  %v4799_v37 = vld [vmem:[#allocation5 + $0x740] ss:$8 sps:$4 sm:$0xff]  }
  0xbb   :  { %3429 = vmatpush1.bf16.msra.mxu0 %v4708_v38  ;;  %v4804_v38 = vld [vmem:[#allocation5 + $0x634] ss:$8 sps:$4 sm:$0xff]  }
  0xbc   :  { %3470 = vmatpush1.bf16.msra.mxu1 %v4711_v39  ;;  %3430 = vmatprep.subr.bf16.mxu0 %v4716_v40  ;;  %v4807_v39 = vld [vmem:[#allocation5 + $0x734] ss:$8 sps:$4 sm:$0xff]   ;;  %v4802_v40 = vld [vmem:[#allocation5 + $0x630] ss:$8 sps:$4 sm:$0xff]  }
  0xbd   :  { %3471 = vmatprep.subr.bf16.mxu1 %v4719_v41  ;;  %v4805_v41 = vld [vmem:[#allocation5 + $0x730] ss:$8 sps:$4 sm:$0xff]  }
  0xbf   :  { %3431 = vmatpush1.bf16.msra.mxu0 %v4714_v42  ;;  %v4810_v42 = vld [vmem:[#allocation5 + $0x624] ss:$8 sps:$4 sm:$0xff]  }
  0xc0   :  { %3472 = vmatpush1.bf16.msra.mxu1 %v4717_v43  ;;  %3432 = vmatprep.subr.bf16.mxu0 %v4722_v44  ;;  %v4813_v43 = vld [vmem:[#allocation5 + $0x724] ss:$8 sps:$4 sm:$0xff]   ;;  %v4808_v44 = vld [vmem:[#allocation5 + $0x620] ss:$8 sps:$4 sm:$0xff]  }
  0xc1   :  { %3473 = vmatprep.subr.bf16.mxu1 %v4725_v45  ;;  %v4811_v45 = vld [vmem:[#allocation5 + $0x720] ss:$8 sps:$4 sm:$0xff]  }
  0xc3   :  { %3433 = vmatpush1.bf16.msra.mxu0 %v4720_v46  ;;  %v4816_v46 = vld [vmem:[#allocation5 + $0x614] ss:$8 sps:$4 sm:$0xff]  }
  0xc4   :  { %3474 = vmatpush1.bf16.msra.mxu1 %v4723_v47  ;;  %3434 = vmatprep.subr.bf16.mxu0 %v4728_v48  ;;  %v4819_v47 = vld [vmem:[#allocation5 + $0x714] ss:$8 sps:$4 sm:$0xff]   ;;  %v4814_v48 = vld [vmem:[#allocation5 + $0x610] ss:$8 sps:$4 sm:$0xff]  }
  0xc5   :  { %3475 = vmatprep.subr.bf16.mxu1 %v4731_v49  ;;  %v4817_v49 = vld [vmem:[#allocation5 + $0x710] ss:$8 sps:$4 sm:$0xff]  }
  0xc7   :  { %3435 = vmatpush2.bf16.msra.mxu0 %v4726_v50  ;;  %v4822_v50 = vld [vmem:[#allocation5 + $0x604] ss:$8 sps:$4 sm:$0xff]  }
  0xc8   :  { %3476 = vmatpush2.bf16.msra.mxu1 %v4729_v51  ;;  %3436 = vmatprep.subr.bf16.mxu0 %v4734_v52  ;;  %v4825_v51 = vld [vmem:[#allocation5 + $0x704] ss:$8 sps:$4 sm:$0xff]   ;;  %v4820_v52 = vld [vmem:[#allocation5 + $0x600] ss:$8 sps:$4 sm:$0xff]  }
  0xc9   :  { %3477 = vmatprep.subr.bf16.mxu1 %v4737_v53  ;;  %v4823_v53 = vld [vmem:[#allocation5 + $0x700] ss:$8 sps:$4 sm:$0xff]  }
  0xcb   :  { %3437 = vmatpush2.bf16.msra.mxu0 %v4732_v54  ;;  %v4828_v54 = vld [vmem:[#allocation5 + $0x6f4] ss:$8 sps:$4 sm:$0xff]  }
  0xcc   :  { %3478 = vmatpush2.bf16.msra.mxu1 %v4735_v55  ;;  %3438 = vmatprep.subr.bf16.mxu0 %v4740_v56  ;;  %v4831_v55 = vld [vmem:[#allocation5 + $0x7f4] ss:$8 sps:$4 sm:$0xff]   ;;  %v4826_v56 = vld [vmem:[#allocation5 + $0x6f0] ss:$8 sps:$4 sm:$0xff]  }
  0xcd   :  { %3479 = vmatprep.subr.bf16.mxu1 %v4743_v57  ;;  %v4829_v57 = vld [vmem:[#allocation5 + $0x7f0] ss:$8 sps:$4 sm:$0xff]  }
  0xcf   :  { %3439 = vmatpush2.bf16.msra.mxu0 %v4738_v58  ;;  %v4834_v58 = vld [vmem:[#allocation5 + $0x6e4] ss:$8 sps:$4 sm:$0xff]  }
  0xd0   :  { %3480 = vmatpush2.bf16.msra.mxu1 %v4741_v59  ;;  %3440 = vmatprep.subr.bf16.mxu0 %v4746_v60  ;;  %v4837_v59 = vld [vmem:[#allocation5 + $0x7e4] ss:$8 sps:$4 sm:$0xff]   ;;  %v4832_v60 = vld [vmem:[#allocation5 + $0x6e0] ss:$8 sps:$4 sm:$0xff]  }
  0xd1   :  { %3481 = vmatprep.subr.bf16.mxu1 %v4749_v61  ;;  %v4835_v61 = vld [vmem:[#allocation5 + $0x7e0] ss:$8 sps:$4 sm:$0xff]  }
  0xd3   :  { %3441 = vmatpush2.bf16.msra.mxu0 %v4744_v62  ;;  %v4840_v62 = vld [vmem:[#allocation5 + $0x6d4] ss:$8 sps:$4 sm:$0xff]  }
  0xd4   :  { %3482 = vmatpush2.bf16.msra.mxu1 %v4747_v63  ;;  %3442 = vmatprep.subr.bf16.mxu0 %v4752_v0  ;;  %v4843_v63 = vld [vmem:[#allocation5 + $0x7d4] ss:$8 sps:$4 sm:$0xff]   ;;  %v4838_v0 = vld [vmem:[#allocation5 + $0x6d0] ss:$8 sps:$4 sm:$0xff]  }
  0xd5   :  { %3483 = vmatprep.subr.bf16.mxu1 %v4755_v1  ;;  %v4841_v1 = vld [vmem:[#allocation5 + $0x7d0] ss:$8 sps:$4 sm:$0xff]  }
  0xd7   :  { %3443 = vmatpush2.bf16.msra.mxu0 %v4750_v2  ;;  %v4846_v2 = vld [vmem:[#allocation5 + $0x6c4] ss:$8 sps:$4 sm:$0xff]  }
  0xd8   :  { %3484 = vmatpush2.bf16.msra.mxu1 %v4753_v3  ;;  %3444 = vmatprep.subr.bf16.mxu0 %v4758_v4  ;;  %v4849_v3 = vld [vmem:[#allocation5 + $0x7c4] ss:$8 sps:$4 sm:$0xff]   ;;  %v4844_v4 = vld [vmem:[#allocation5 + $0x6c0] ss:$8 sps:$4 sm:$0xff]  }
  0xd9   :  { %3485 = vmatprep.subr.bf16.mxu1 %v4761_v5  ;;  %v4847_v5 = vld [vmem:[#allocation5 + $0x7c0] ss:$8 sps:$4 sm:$0xff]  }
  0xdb   :  { %3445 = vmatpush2.bf16.msra.mxu0 %v4756_v6  ;;  %v4852_v6 = vld [vmem:[#allocation5 + $0x6b4] ss:$8 sps:$4 sm:$0xff]  }
  0xdc   :  { %3486 = vmatpush2.bf16.msra.mxu1 %v4759_v7  ;;  %3446 = vmatprep.subr.bf16.mxu0 %v4764_v8  ;;  %v4855_v7 = vld [vmem:[#allocation5 + $0x7b4] ss:$8 sps:$4 sm:$0xff]   ;;  %v4850_v8 = vld [vmem:[#allocation5 + $0x6b0] ss:$8 sps:$4 sm:$0xff]  }
  0xdd   :  { %3487 = vmatprep.subr.bf16.mxu1 %v4767_v9  ;;  %v4853_v9 = vld [vmem:[#allocation5 + $0x7b0] ss:$8 sps:$4 sm:$0xff]  }
  0xdf   :  { %3447 = vmatpush2.bf16.msra.mxu0 %v4762_v10  ;;  %v4858_v10 = vld [vmem:[#allocation5 + $0x6a4] ss:$8 sps:$4 sm:$0xff]  }
  0xe0   :  { %3488 = vmatpush2.bf16.msra.mxu1 %v4765_v11  ;;  %3448 = vmatprep.subr.bf16.mxu0 %v4770_v12  ;;  %v4861_v11 = vld [vmem:[#allocation5 + $0x7a4] ss:$8 sps:$4 sm:$0xff]   ;;  %v4856_v12 = vld [vmem:[#allocation5 + $0x6a0] ss:$8 sps:$4 sm:$0xff]  }
  0xe1   :  { %3489 = vmatprep.subr.bf16.mxu1 %v4773_v13  ;;  %v4859_v13 = vld [vmem:[#allocation5 + $0x7a0] ss:$8 sps:$4 sm:$0xff]  }
  0xe3   :  { %3449 = vmatpush2.bf16.msra.mxu0 %v4768_v14  ;;  %v4864_v14 = vld [vmem:[#allocation5 + $0x694] ss:$8 sps:$4 sm:$0xff]  }
  0xe4   :  { %3490 = vmatpush2.bf16.msra.mxu1 %v4771_v15  ;;  %3500 = vmatprep.subr.bf16.mxu0 %v4780_v16  ;;  %v4867_v15 = vld [vmem:[#allocation5 + $0x794] ss:$8 sps:$4 sm:$0xff]   ;;  %v4862_v16 = vld [vmem:[#allocation5 + $0x690] ss:$8 sps:$4 sm:$0xff]  }
  0xe5   :  { %3541 = vmatprep.subr.bf16.mxu1 %v4783_v17  ;;  %v4865_v17 = vld [vmem:[#allocation5 + $0x790] ss:$8 sps:$4 sm:$0xff]  }
  0xe6   :  { %3451 = vmatmul.mubr.bf16.vlgmr.msra.gmra.mxu0 %v3936_v21  ;;  %v4870_v21 = vld [vmem:[#allocation5 + $0x684] ss:$8 sps:$4 sm:$0xff]  }
  0xe7   :  { %3492 = vmatmul.mubr.bf16.vlgmr.msra.gmra.mxu1 %v3938_v22  ;;  %3501 = vmatpush1.bf16.msra.mxu0 %v4778_v24  ;;  %v4873_v22 = vld [vmem:[#allocation5 + $0x784] ss:$8 sps:$4 sm:$0xff]   ;;  %v4868_v24 = vld [vmem:[#allocation5 + $0x680] ss:$8 sps:$4 sm:$0xff]  }
  0xe8   :  { %3542 = vmatpush1.bf16.msra.mxu1 %v4781_v25  ;;  %3502 = vmatprep.subr.bf16.mxu0 %v4786_v26  ;;  %v4871_v25 = vld [vmem:[#allocation5 + $0x780] ss:$8 sps:$4 sm:$0xff]   ;;  %v4880_v26 = vld [vmem:[#allocation5 + $0x874] ss:$8 sps:$4 sm:$0xff]  }
  0xe9   :  { %3543 = vmatprep.subr.bf16.mxu1 %v4789_v27  ;;  %3532 = vmatprep.mubr.bf16.mxu0 %v3941_v28  ;;  %v4883_v27 = vld [vmem:[#allocation5 + $0x974] ss:$8 sps:$4 sm:$0xff]   ;;  %v4878_v28 = vld [vmem:[#allocation5 + $0x870] ss:$8 sps:$4 sm:$0xff]  }
  0xea   :  { %3573 = vmatprep.mubr.bf16.mxu1 %v3943_v29  ;;  %v4881_v29 = vld [vmem:[#allocation5 + $0x970] ss:$8 sps:$4 sm:$0xff]  }
  0xeb   :  { %3503 = vmatpush1.bf16.msra.mxu0 %v4784_v18  ;;  %v3940_v18 = vcombine.low %v5419_v20, %v5419_v20 }
  0xec   :  { %3544 = vmatpush1.bf16.msra.mxu1 %v4787_v19  ;;  %3504 = vmatprep.subr.bf16.mxu0 %v4792_v30  ;;  %v3942_v19 = vcombine.low %v5425_v23, %v5425_v23  ;;  %v580_v30 = vld [vmem:[#allocation7] sm:$0xff]  ;;  %v581_v23 = vld [vmem:[#allocation7 + $0x8] sm:$0xff] }
  0xed   :  { %3545 = vmatprep.subr.bf16.mxu1 %v4795_v31  ;;  %v5435_v31 = vld [vmem:[#allocation2 + $0x40] sm:$0xff] }
  0xef   :  { %3505 = vmatpush1.bf16.msra.mxu0 %v4790_v32  ;;  %v5437_v32 = vld [vmem:[#allocation2 + $0x48] sm:$0xff] }
  0xf0   :  { %3546 = vmatpush1.bf16.msra.mxu1 %v4793_v33  ;;  %3506 = vmatprep.subr.bf16.mxu0 %v4798_v34  ;;  %v4886_v33 = vld [vmem:[#allocation5 + $0x864] ss:$8 sps:$4 sm:$0xff]   ;;  %v3947_v20 = vcombine.high %v5437_v32, %v5437_v32 }
  0xf1   :  { %3547 = vmatprep.subr.bf16.mxu1 %v4801_v35  ;;  %v4889_v34 = vld [vmem:[#allocation5 + $0x964] ss:$8 sps:$4 sm:$0xff]   ;;  %v3945_v35 = vcombine.high %v5435_v31, %v5435_v31 }
  0xf3   :  { %3507 = vmatpush1.bf16.msra.mxu0 %v4796_v36 }
  0xf4   :  { %3548 = vmatpush1.bf16.msra.mxu1 %v4799_v37  ;;  %3508 = vmatprep.subr.bf16.mxu0 %v4804_v38 }
  0xf5   :  { %3549 = vmatprep.subr.bf16.mxu1 %v4807_v39  ;;  %v4884_v39 = vld [vmem:[#allocation5 + $0x860] ss:$8 sps:$4 sm:$0xff]  }
  0xf7   :  { %3509 = vmatpush1.bf16.msra.mxu0 %v4802_v40  ;;  %v4887_v40 = vld [vmem:[#allocation5 + $0x960] ss:$8 sps:$4 sm:$0xff]  }
  0xf8   :  { %3550 = vmatpush1.bf16.msra.mxu1 %v4805_v41  ;;  %3510 = vmatprep.subr.bf16.mxu0 %v4810_v42 }
  0xf9   :  { %3551 = vmatprep.subr.bf16.mxu1 %v4813_v43  ;;  %v4892_v43 = vld [vmem:[#allocation5 + $0x854] ss:$8 sps:$4 sm:$0xff]  }
  0xfb   :  { %3511 = vmatpush1.bf16.msra.mxu0 %v4808_v44  ;;  %v4895_v44 = vld [vmem:[#allocation5 + $0x954] ss:$8 sps:$4 sm:$0xff]  }
  0xfc   :  { %3552 = vmatpush1.bf16.msra.mxu1 %v4811_v45  ;;  %3512 = vmatprep.subr.bf16.mxu0 %v4816_v46 }
  0xfd   :  { %3553 = vmatprep.subr.bf16.mxu1 %v4819_v47 }
  0xff   :  { %3513 = vmatpush1.bf16.msra.mxu0 %v4814_v48 }
 0x100   :  { %3554 = vmatpush1.bf16.msra.mxu1 %v4817_v49  ;;  %3514 = vmatprep.subr.bf16.mxu0 %v4822_v50  ;;  %v4890_v50 = vld [vmem:[#allocation5 + $0x850] ss:$8 sps:$4 sm:$0xff]  }
 0x101   :  { %3555 = vmatprep.subr.bf16.mxu1 %v4825_v51  ;;  %v4893_v51 = vld [vmem:[#allocation5 + $0x950] ss:$8 sps:$4 sm:$0xff]  }
 0x103   :  { %3515 = vmatpush1.bf16.msra.mxu0 %v4820_v52 }
 0x104   :  { %3556 = vmatpush1.bf16.msra.mxu1 %v4823_v53  ;;  %3516 = vmatprep.subr.bf16.mxu0 %v4828_v54  ;;  %v4898_v54 = vld [vmem:[#allocation5 + $0x844] ss:$8 sps:$4 sm:$0xff]  }
 0x105   :  { %3557 = vmatprep.subr.bf16.mxu1 %v4831_v55  ;;  %v4901_v55 = vld [vmem:[#allocation5 + $0x944] ss:$8 sps:$4 sm:$0xff]  }
 0x107   :  { %3517 = vmatpush2.bf16.msra.mxu0 %v4826_v56  ;;  %v4896_v56 = vld [vmem:[#allocation5 + $0x840] ss:$8 sps:$4 sm:$0xff]  }
 0x108   :  { %3558 = vmatpush2.bf16.msra.mxu1 %v4829_v57  ;;  %3518 = vmatprep.subr.bf16.mxu0 %v4834_v58  ;;  %v4899_v57 = vld [vmem:[#allocation5 + $0x940] ss:$8 sps:$4 sm:$0xff]   ;;  %v4904_v58 = vld [vmem:[#allocation5 + $0x834] ss:$8 sps:$4 sm:$0xff]  }
 0x109   :  { %3559 = vmatprep.subr.bf16.mxu1 %v4837_v59  ;;  %v4907_v59 = vld [vmem:[#allocation5 + $0x934] ss:$8 sps:$4 sm:$0xff]  }
 0x10b   :  { %3519 = vmatpush2.bf16.msra.mxu0 %v4832_v60  ;;  %v4902_v60 = vld [vmem:[#allocation5 + $0x830] ss:$8 sps:$4 sm:$0xff]  }
 0x10c   :  { %3560 = vmatpush2.bf16.msra.mxu1 %v4835_v61  ;;  %3520 = vmatprep.subr.bf16.mxu0 %v4840_v62  ;;  %v4905_v61 = vld [vmem:[#allocation5 + $0x930] ss:$8 sps:$4 sm:$0xff]   ;;  %v4910_v62 = vld [vmem:[#allocation5 + $0x824] ss:$8 sps:$4 sm:$0xff]  }
 0x10d   :  { %3561 = vmatprep.subr.bf16.mxu1 %v4843_v63  ;;  %v4913_v63 = vld [vmem:[#allocation5 + $0x924] ss:$8 sps:$4 sm:$0xff]  }
 0x10f   :  { %3521 = vmatpush2.bf16.msra.mxu0 %v4838_v0  ;;  %v4908_v0 = vld [vmem:[#allocation5 + $0x820] ss:$8 sps:$4 sm:$0xff]  }
 0x110   :  { %3562 = vmatpush2.bf16.msra.mxu1 %v4841_v1  ;;  %3522 = vmatprep.subr.bf16.mxu0 %v4846_v2  ;;  %v4911_v1 = vld [vmem:[#allocation5 + $0x920] ss:$8 sps:$4 sm:$0xff]   ;;  %v4916_v2 = vld [vmem:[#allocation5 + $0x814] ss:$8 sps:$4 sm:$0xff]  }
 0x111   :  { %3563 = vmatprep.subr.bf16.mxu1 %v4849_v3  ;;  %v4919_v3 = vld [vmem:[#allocation5 + $0x914] ss:$8 sps:$4 sm:$0xff]  }
 0x113   :  { %3523 = vmatpush2.bf16.msra.mxu0 %v4844_v4  ;;  %v4914_v4 = vld [vmem:[#allocation5 + $0x810] ss:$8 sps:$4 sm:$0xff]  }
 0x114   :  { %3564 = vmatpush2.bf16.msra.mxu1 %v4847_v5  ;;  %3524 = vmatprep.subr.bf16.mxu0 %v4852_v6  ;;  %v4917_v5 = vld [vmem:[#allocation5 + $0x910] ss:$8 sps:$4 sm:$0xff]   ;;  %v4922_v6 = vld [vmem:[#allocation5 + $0x804] ss:$8 sps:$4 sm:$0xff]  }
 0x115   :  { %3565 = vmatprep.subr.bf16.mxu1 %v4855_v7  ;;  %v4925_v7 = vld [vmem:[#allocation5 + $0x904] ss:$8 sps:$4 sm:$0xff]  }
 0x117   :  { %3525 = vmatpush2.bf16.msra.mxu0 %v4850_v8  ;;  %v4920_v8 = vld [vmem:[#allocation5 + $0x800] ss:$8 sps:$4 sm:$0xff]  }
 0x118   :  { %3566 = vmatpush2.bf16.msra.mxu1 %v4853_v9  ;;  %3526 = vmatprep.subr.bf16.mxu0 %v4858_v10  ;;  %v4923_v9 = vld [vmem:[#allocation5 + $0x900] ss:$8 sps:$4 sm:$0xff]   ;;  %v4928_v10 = vld [vmem:[#allocation5 + $0x8f4] ss:$8 sps:$4 sm:$0xff]  }
 0x119   :  { %3567 = vmatprep.subr.bf16.mxu1 %v4861_v11  ;;  %v4931_v11 = vld [vmem:[#allocation5 + $0x9f4] ss:$8 sps:$4 sm:$0xff]  }
 0x11b   :  { %3527 = vmatpush2.bf16.msra.mxu0 %v4856_v12  ;;  %v4926_v12 = vld [vmem:[#allocation5 + $0x8f0] ss:$8 sps:$4 sm:$0xff]  }
 0x11c   :  { %3568 = vmatpush2.bf16.msra.mxu1 %v4859_v13  ;;  %3528 = vmatprep.subr.bf16.mxu0 %v4864_v14  ;;  %v4929_v13 = vld [vmem:[#allocation5 + $0x9f0] ss:$8 sps:$4 sm:$0xff]   ;;  %v4934_v14 = vld [vmem:[#allocation5 + $0x8e4] ss:$8 sps:$4 sm:$0xff]  }
 0x11d   :  { %3569 = vmatprep.subr.bf16.mxu1 %v4867_v15  ;;  %v4937_v15 = vld [vmem:[#allocation5 + $0x9e4] ss:$8 sps:$4 sm:$0xff]  }
 0x11f   :  { %3529 = vmatpush2.bf16.msra.mxu0 %v4862_v16  ;;  %v4932_v16 = vld [vmem:[#allocation5 + $0x8e0] ss:$8 sps:$4 sm:$0xff]  }
 0x120   :  { %3570 = vmatpush2.bf16.msra.mxu1 %v4865_v17  ;;  %3530 = vmatprep.subr.bf16.mxu0 %v4870_v21  ;;  %v4935_v17 = vld [vmem:[#allocation5 + $0x9e0] ss:$8 sps:$4 sm:$0xff]   ;;  %v4940_v21 = vld [vmem:[#allocation5 + $0x8d4] ss:$8 sps:$4 sm:$0xff]  }
 0x121   :  { %3571 = vmatprep.subr.bf16.mxu1 %v4873_v22  ;;  %v4943_v22 = vld [vmem:[#allocation5 + $0x9d4] ss:$8 sps:$4 sm:$0xff]  }
 0x123   :  { %3531 = vmatpush2.bf16.msra.mxu0 %v4868_v24  ;;  %v4938_v24 = vld [vmem:[#allocation5 + $0x8d0] ss:$8 sps:$4 sm:$0xff]  }
 0x124   :  { %3572 = vmatpush2.bf16.msra.mxu1 %v4871_v25  ;;  %3582 = vmatprep.subr.bf16.mxu0 %v4880_v26  ;;  %v4941_v25 = vld [vmem:[#allocation5 + $0x9d0] ss:$8 sps:$4 sm:$0xff]   ;;  %v4946_v26 = vld [vmem:[#allocation5 + $0x8c4] ss:$8 sps:$4 sm:$0xff]  }
 0x125   :  { %3623 = vmatprep.subr.bf16.mxu1 %v4883_v27  ;;  %v4949_v27 = vld [vmem:[#allocation5 + $0x9c4] ss:$8 sps:$4 sm:$0xff]  }
 0x126   :  { %v3288_v36 = vpop.f32.mrf.mxu0  ;;  %3533 = vmatmul.mubr.bf16.vlgmr.msra.gmra.mxu0 %v3940_v18  ;;  %v4952_v18 = vld [vmem:[#allocation5 + $0x8b4] ss:$8 sps:$4 sm:$0xff]  }
 0x127   :  { %v3329_v37 = vpop.f32.mrf.mxu1  ;;  %3574 = vmatmul.mubr.bf16.vlgmr.msra.gmra.mxu1 %v3942_v19  ;;  %v3289_v38 = vadd.f32 %v3288_v36, %v580_v30  ;;  %3583 = vmatpush1.bf16.msra.mxu0 %v4878_v28  ;;  %v4944_v28 = vld [vmem:[#allocation5 + $0x8c0] ss:$8 sps:$4 sm:$0xff]   ;;  %v4955_v19 = vld [vmem:[#allocation5 + $0x9b4] ss:$8 sps:$4 sm:$0xff]   ;;  %v4950_v30 = vld [vmem:[#allocation5 + $0x8b0] ss:$8 sps:$4 sm:$0xff]  }
 0x128   :  { %3624 = vmatpush1.bf16.msra.mxu1 %v4881_v29  ;;  %v3290_v41 = vpop.f32.mrf.mxu0  ;;  %3584 = vmatprep.subr.bf16.mxu0 %v4886_v33  ;;  %v4947_v29 = vld [vmem:[#allocation5 + $0x9c0] ss:$8 sps:$4 sm:$0xff]   ;;  %v4953_v33 = vld [vmem:[#allocation5 + $0x9b0] ss:$8 sps:$4 sm:$0xff]  }
 0x129   :  { %v3331_v42 = vpop.f32.mrf.mxu1  ;;  %3625 = vmatprep.subr.bf16.mxu1 %v4889_v34  ;;  %v5443_v45 = vadd.f32 %v3329_v37, %v3289_v38  ;;  %v3291_v46 = vadd.f32 %v3290_v41, %v581_v23  ;;  %3614 = vmatprep.mubr.bf16.mxu0 %v3945_v35  ;;  %v4958_v34 = vld [vmem:[#allocation5 + $0x8a4] ss:$8 sps:$4 sm:$0xff]   ;;  %v4959_v36 = vld [vmem:[#allocation5 + $0x9a0] ss:$8 sps:$4 sm:$0xff]   ;;  %v4964_v37 = vld [vmem:[#allocation5 + $0x894] ss:$8 sps:$4 sm:$0xff]  }
 0x12a   :  { %3655 = vmatprep.mubr.bf16.mxu1 %v3947_v20  ;;  %v3292_v47 = vpop.f32.mrf.mxu0  ;;  %v4961_v35 = vld [vmem:[#allocation5 + $0x9a4] ss:$8 sps:$4 sm:$0xff]   ;;  %v4956_v20 = vld [vmem:[#allocation5 + $0x8a0] ss:$8 sps:$4 sm:$0xff]   ;;  %v4967_v23 = vld [vmem:[#allocation5 + $0x994] ss:$8 sps:$4 sm:$0xff]  }
 0x12b   :  { %v3333_v48 = vpop.f32.mrf.mxu1  ;;  %v5445_v49 = vadd.f32 %v3331_v42, %v3291_v46  ;;  %3585 = vmatpush1.bf16.msra.mxu0 %v4884_v39  ;;  %v4962_v38 = vld [vmem:[#allocation5 + $0x890] ss:$8 sps:$4 sm:$0xff]   ;;  %v4973_v41 = vld [vmem:[#allocation5 + $0x984] ss:$8 sps:$4 sm:$0xff]   ;;  %v4968_v42 = vld [vmem:[#allocation5 + $0x880] ss:$8 sps:$4 sm:$0xff]  }
 0x12c   :  { %3626 = vmatpush1.bf16.msra.mxu1 %v4887_v40  ;;  %v3293_v52 = vpop.f32.mrf.mxu0  ;;  %3586 = vmatprep.subr.bf16.mxu0 %v4892_v43  ;;  %v4965_v39 = vld [vmem:[#allocation5 + $0x990] ss:$8 sps:$4 sm:$0xff]   ;;  %v4970_v40 = vld [vmem:[#allocation5 + $0x884] ss:$8 sps:$4 sm:$0xff]   ;;  %v4971_v43 = vld [vmem:[#allocation5 + $0x980] ss:$8 sps:$4 sm:$0xff]  }
 0x12d   :  { %v3334_v53 = vpop.f32.mrf.mxu1  ;;  %3627 = vmatprep.subr.bf16.mxu1 %v4895_v44  ;;  %v4980_v44 = vld [vmem:[#allocation5 + $0xa74] ss:$8 sps:$4 sm:$0xff]   ;;  %v4978_v47 = vld [vmem:[#allocation5 + $0xa70] ss:$8 sps:$4 sm:$0xff]  }
 0x12e   :  { %v4983_v46 = vld [vmem:[#allocation5 + $0xb74] ss:$8 sps:$4 sm:$0xff]   ;;  %v4981_v48 = vld [vmem:[#allocation5 + $0xb70] ss:$8 sps:$4 sm:$0xff]  }
 0x12f   :  { %3587 = vmatpush1.bf16.msra.mxu0 %v4890_v50  ;;  %v3944_v50 = vcombine.low %v5435_v31, %v5435_v31  ;;  %v5451_v52 = vld [vmem:[#allocation2 + $0x50] sm:$0xff]  ;;  %v5453_v53 = vld [vmem:[#allocation2 + $0x58] sm:$0xff] }
 0x130   :  { %3628 = vmatpush1.bf16.msra.mxu1 %v4893_v51  ;;  %3588 = vmatprep.subr.bf16.mxu0 %v4898_v54  ;;  %v3946_v51 = vcombine.low %v5437_v32, %v5437_v32  ;;  %v4986_v54 = vld [vmem:[#allocation5 + $0xa64] ss:$8 sps:$4 sm:$0xff]   ;;  %v3951_v31 = vcombine.high %v5453_v53, %v5453_v53 }
 0x131   :  { %3629 = vmatprep.subr.bf16.mxu1 %v4901_v55  ;;  %v4989_v55 = vld [vmem:[#allocation5 + $0xb64] ss:$8 sps:$4 sm:$0xff]  }
 0x133   :  { %3589 = vmatpush1.bf16.msra.mxu0 %v4896_v56  ;;  %v4984_v56 = vld [vmem:[#allocation5 + $0xa60] ss:$8 sps:$4 sm:$0xff]  }
 0x134   :  { %3630 = vmatpush1.bf16.msra.mxu1 %v4899_v57  ;;  %3590 = vmatprep.subr.bf16.mxu0 %v4904_v58  ;;  %v4987_v57 = vld [vmem:[#allocation5 + $0xb60] ss:$8 sps:$4 sm:$0xff]   ;;  %v3949_v58 = vcombine.high %v5451_v52, %v5451_v52 }
 0x135   :  { %3631 = vmatprep.subr.bf16.mxu1 %v4907_v59 }
 0x137   :  { %3591 = vmatpush1.bf16.msra.mxu0 %v4902_v60 }
 0x138   :  { %3632 = vmatpush1.bf16.msra.mxu1 %v4905_v61  ;;  %3592 = vmatprep.subr.bf16.mxu0 %v4910_v62 }
 0x139   :  { %3633 = vmatprep.subr.bf16.mxu1 %v4913_v63  ;;  %v4992_v63 = vld [vmem:[#allocation5 + $0xa54] ss:$8 sps:$4 sm:$0xff]  }
 0x13b   :  { %3593 = vmatpush1.bf16.msra.mxu0 %v4908_v0  ;;  %v4995_v0 = vld [vmem:[#allocation5 + $0xb54] ss:$8 sps:$4 sm:$0xff]  }
 0x13c   :  { %3634 = vmatpush1.bf16.msra.mxu1 %v4911_v1  ;;  %3594 = vmatprep.subr.bf16.mxu0 %v4916_v2 }
 0x13d   :  { %3635 = vmatprep.subr.bf16.mxu1 %v4919_v3 }
 0x13f   :  { %3595 = vmatpush1.bf16.msra.mxu0 %v4914_v4 }
 0x140   :  { %3636 = vmatpush1.bf16.msra.mxu1 %v4917_v5  ;;  %3596 = vmatprep.subr.bf16.mxu0 %v4922_v6  ;;  %v4993_v6 = vld [vmem:[#allocation5 + $0xb50] ss:$8 sps:$4 sm:$0xff]  }
 0x141   :  { %3637 = vmatprep.subr.bf16.mxu1 %v4925_v7 }
 0x143   :  { %3597 = vmatpush1.bf16.msra.mxu0 %v4920_v8 }
 0x144   :  { %3638 = vmatpush1.bf16.msra.mxu1 %v4923_v9  ;;  %3598 = vmatprep.subr.bf16.mxu0 %v4928_v10  ;;  %v4998_v9 = vld [vmem:[#allocation5 + $0xa44] ss:$8 sps:$4 sm:$0xff]  }
 0x145   :  { %3639 = vmatprep.subr.bf16.mxu1 %v4931_v11  ;;  %v5001_v10 = vld [vmem:[#allocation5 + $0xb44] ss:$8 sps:$4 sm:$0xff]   ;;  %v4996_v11 = vld [vmem:[#allocation5 + $0xa40] ss:$8 sps:$4 sm:$0xff]  }
 0x147   :  { %3599 = vmatpush2.bf16.msra.mxu0 %v4926_v12  ;;  %v5004_v12 = vld [vmem:[#allocation5 + $0xa34] ss:$8 sps:$4 sm:$0xff]  }
 0x148   :  { %3640 = vmatpush2.bf16.msra.mxu1 %v4929_v13  ;;  %3600 = vmatprep.subr.bf16.mxu0 %v4934_v14  ;;  %v5007_v13 = vld [vmem:[#allocation5 + $0xb34] ss:$8 sps:$4 sm:$0xff]   ;;  %v5002_v14 = vld [vmem:[#allocation5 + $0xa30] ss:$8 sps:$4 sm:$0xff]  }
 0x149   :  { %3641 = vmatprep.subr.bf16.mxu1 %v4937_v15  ;;  %v5005_v15 = vld [vmem:[#allocation5 + $0xb30] ss:$8 sps:$4 sm:$0xff]  }
 0x14b   :  { %3601 = vmatpush2.bf16.msra.mxu0 %v4932_v16  ;;  %v5010_v16 = vld [vmem:[#allocation5 + $0xa24] ss:$8 sps:$4 sm:$0xff]  }
 0x14c   :  { %3642 = vmatpush2.bf16.msra.mxu1 %v4935_v17  ;;  %3602 = vmatprep.subr.bf16.mxu0 %v4940_v21  ;;  %v5013_v17 = vld [vmem:[#allocation5 + $0xb24] ss:$8 sps:$4 sm:$0xff]   ;;  %v5008_v21 = vld [vmem:[#allocation5 + $0xa20] ss:$8 sps:$4 sm:$0xff]  }
 0x14d   :  { %3643 = vmatprep.subr.bf16.mxu1 %v4943_v22  ;;  %v5011_v22 = vld [vmem:[#allocation5 + $0xb20] ss:$8 sps:$4 sm:$0xff]  }
 0x14f   :  { %3603 = vmatpush2.bf16.msra.mxu0 %v4938_v24  ;;  %v5016_v24 = vld [vmem:[#allocation5 + $0xa14] ss:$8 sps:$4 sm:$0xff]  }
 0x150   :  { %3644 = vmatpush2.bf16.msra.mxu1 %v4941_v25  ;;  %3604 = vmatprep.subr.bf16.mxu0 %v4946_v26  ;;  %v5019_v25 = vld [vmem:[#allocation5 + $0xb14] ss:$8 sps:$4 sm:$0xff]   ;;  %v5014_v26 = vld [vmem:[#allocation5 + $0xa10] ss:$8 sps:$4 sm:$0xff]  }
 0x151   :  { %3645 = vmatprep.subr.bf16.mxu1 %v4949_v27  ;;  %v5017_v27 = vld [vmem:[#allocation5 + $0xb10] ss:$8 sps:$4 sm:$0xff]  }
 0x153   :  { %3605 = vmatpush2.bf16.msra.mxu0 %v4944_v28  ;;  %v5022_v28 = vld [vmem:[#allocation5 + $0xa04] ss:$8 sps:$4 sm:$0xff]  }
 0x154   :  { %3646 = vmatpush2.bf16.msra.mxu1 %v4947_v29  ;;  %3606 = vmatprep.subr.bf16.mxu0 %v4952_v18  ;;  %v5025_v29 = vld [vmem:[#allocation5 + $0xb04] ss:$8 sps:$4 sm:$0xff]   ;;  %v5020_v18 = vld [vmem:[#allocation5 + $0xa00] ss:$8 sps:$4 sm:$0xff]  }
 0x155   :  { %3647 = vmatprep.subr.bf16.mxu1 %v4955_v19  ;;  %v5023_v19 = vld [vmem:[#allocation5 + $0xb00] ss:$8 sps:$4 sm:$0xff]  }
 0x157   :  { %3607 = vmatpush2.bf16.msra.mxu0 %v4950_v30  ;;  %v5028_v30 = vld [vmem:[#allocation5 + $0xaf4] ss:$8 sps:$4 sm:$0xff]  }
 0x158   :  { %3648 = vmatpush2.bf16.msra.mxu1 %v4953_v33  ;;  %3608 = vmatprep.subr.bf16.mxu0 %v4958_v34  ;;  %v5031_v33 = vld [vmem:[#allocation5 + $0xbf4] ss:$8 sps:$4 sm:$0xff]   ;;  %v5026_v34 = vld [vmem:[#allocation5 + $0xaf0] ss:$8 sps:$4 sm:$0xff]  }
 0x159   :  { %3649 = vmatprep.subr.bf16.mxu1 %v4961_v35  ;;  %v5029_v35 = vld [vmem:[#allocation5 + $0xbf0] ss:$8 sps:$4 sm:$0xff]  }
 0x15b   :  { %3609 = vmatpush2.bf16.msra.mxu0 %v4956_v20  ;;  %v5034_v20 = vld [vmem:[#allocation5 + $0xae4] ss:$8 sps:$4 sm:$0xff]  }
 0x15c   :  { %3650 = vmatpush2.bf16.msra.mxu1 %v4959_v36  ;;  %3610 = vmatprep.subr.bf16.mxu0 %v4964_v37  ;;  %v5037_v36 = vld [vmem:[#allocation5 + $0xbe4] ss:$8 sps:$4 sm:$0xff]   ;;  %v5032_v37 = vld [vmem:[#allocation5 + $0xae0] ss:$8 sps:$4 sm:$0xff]  }
 0x15d   :  { %3651 = vmatprep.subr.bf16.mxu1 %v4967_v23  ;;  %v5035_v23 = vld [vmem:[#allocation5 + $0xbe0] ss:$8 sps:$4 sm:$0xff]  }
 0x15f   :  { %3611 = vmatpush2.bf16.msra.mxu0 %v4962_v38  ;;  %v5040_v38 = vld [vmem:[#allocation5 + $0xad4] ss:$8 sps:$4 sm:$0xff]  }
 0x160   :  { %3652 = vmatpush2.bf16.msra.mxu1 %v4965_v39  ;;  %3612 = vmatprep.subr.bf16.mxu0 %v4970_v40  ;;  %v5043_v39 = vld [vmem:[#allocation5 + $0xbd4] ss:$8 sps:$4 sm:$0xff]   ;;  %v5038_v40 = vld [vmem:[#allocation5 + $0xad0] ss:$8 sps:$4 sm:$0xff]  }
 0x161   :  { %3653 = vmatprep.subr.bf16.mxu1 %v4973_v41  ;;  %v5041_v41 = vld [vmem:[#allocation5 + $0xbd0] ss:$8 sps:$4 sm:$0xff]  }
 0x163   :  { %3613 = vmatpush2.bf16.msra.mxu0 %v4968_v42  ;;  %v5046_v42 = vld [vmem:[#allocation5 + $0xac4] ss:$8 sps:$4 sm:$0xff]  }
 0x164   :  { %3654 = vmatpush2.bf16.msra.mxu1 %v4971_v43  ;;  %3664 = vmatprep.subr.bf16.mxu0 %v4980_v44  ;;  %v5049_v43 = vld [vmem:[#allocation5 + $0xbc4] ss:$8 sps:$4 sm:$0xff]   ;;  %v5044_v44 = vld [vmem:[#allocation5 + $0xac0] ss:$8 sps:$4 sm:$0xff]  }
 0x165   :  { %3705 = vmatprep.subr.bf16.mxu1 %v4983_v46  ;;  %v5047_v46 = vld [vmem:[#allocation5 + $0xbc0] ss:$8 sps:$4 sm:$0xff]  }
 0x166   :  { %v3370_v59 = vpop.f32.mrf.mxu0  ;;  %3615 = vmatmul.mubr.bf16.vlgmr.msra.gmra.mxu0 %v3944_v50  ;;  %v5050_v50 = vld [vmem:[#allocation5 + $0xab0] ss:$8 sps:$4 sm:$0xff]  }
 0x167   :  { %v3411_v32 = vpop.f32.mrf.mxu1  ;;  %3656 = vmatmul.mubr.bf16.vlgmr.msra.gmra.mxu1 %v3946_v51  ;;  %v3371_v60 = vadd.f32 %v3370_v59, %v5443_v45  ;;  %3665 = vmatpush1.bf16.msra.mxu0 %v4978_v47  ;;  %v4990_v45 = vld [vmem:[#allocation5 + $0xa50] ss:$8 sps:$4 sm:$0xff]   ;;  %v5052_v47 = vld [vmem:[#allocation5 + $0xab4] ss:$8 sps:$4 sm:$0xff]  }
 0x168   :  { %3706 = vmatpush1.bf16.msra.mxu1 %v4981_v48  ;;  %v3372_v61 = vpop.f32.mrf.mxu0  ;;  %3666 = vmatprep.subr.bf16.mxu0 %v4986_v54  ;;  %v5055_v48 = vld [vmem:[#allocation5 + $0xbb4] ss:$8 sps:$4 sm:$0xff]   ;;  %v5053_v51 = vld [vmem:[#allocation5 + $0xbb0] ss:$8 sps:$4 sm:$0xff]   ;;  %v5058_v54 = vld [vmem:[#allocation5 + $0xaa4] ss:$8 sps:$4 sm:$0xff]  }
 0x169   :  { %v3413_v62 = vpop.f32.mrf.mxu1  ;;  %3707 = vmatprep.subr.bf16.mxu1 %v4989_v55  ;;  %v5460_v1 = vadd.f32 %v3411_v32, %v3371_v60  ;;  %v3373_v2 = vadd.f32 %v3372_v61, %v5445_v49  ;;  %3696 = vmatprep.mubr.bf16.mxu0 %v3949_v58  ;;  %v4999_v49 = vld [vmem:[#allocation5 + $0xb40] ss:$8 sps:$4 sm:$0xff]   ;;  %v5061_v55 = vld [vmem:[#allocation5 + $0xba4] ss:$8 sps:$4 sm:$0xff]   ;;  %v5064_v58 = vld [vmem:[#allocation5 + $0xa94] ss:$8 sps:$4 sm:$0xff]  }
 0x16a   :  { %3737 = vmatprep.mubr.bf16.mxu1 %v3951_v31  ;;  %v3374_v3 = vpop.f32.mrf.mxu0  ;;  %v5067_v31 = vld [vmem:[#allocation5 + $0xb94] ss:$8 sps:$4 sm:$0xff]   ;;  %v5062_v59 = vld [vmem:[#allocation5 + $0xa90] ss:$8 sps:$4 sm:$0xff]   ;;  %v5070_v60 = vld [vmem:[#allocation5 + $0xa84] ss:$8 sps:$4 sm:$0xff]  }
 0x16b   :  { %v3415_v4 = vpop.f32.mrf.mxu1  ;;  %v5463_v5 = vadd.f32 %v3413_v62, %v3373_v2  ;;  %3667 = vmatpush1.bf16.msra.mxu0 %v4984_v56  ;;  %v5056_v56 = vld [vmem:[#allocation5 + $0xaa0] ss:$8 sps:$4 sm:$0xff]   ;;  %v5065_v32 = vld [vmem:[#allocation5 + $0xb90] ss:$8 sps:$4 sm:$0xff]   ;;  %v5073_v61 = vld [vmem:[#allocation5 + $0xb84] ss:$8 sps:$4 sm:$0xff]   ;;  %v3948_v3 = vcombine.low %v5451_v52, %v5451_v52 }
 0x16c   :  { %3708 = vmatpush1.bf16.msra.mxu1 %v4987_v57  ;;  %v3375_v7 = vpop.f32.mrf.mxu0  ;;  %3668 = vmatprep.subr.bf16.mxu0 %v4992_v63  ;;  %v5059_v57 = vld [vmem:[#allocation5 + $0xba0] ss:$8 sps:$4 sm:$0xff]   ;;  %v5083_v2 = vld [vmem:[#allocation5 + $0xd74] ss:$8 sps:$4 sm:$0xff]   ;;  %v3950_v4 = vcombine.low %v5453_v53, %v5453_v53 }
 0x16d   :  { %v3416_v8 = vpop.f32.mrf.mxu1  ;;  %3709 = vmatprep.subr.bf16.mxu1 %v4995_v0  ;;  %v5068_v62 = vld [vmem:[#allocation5 + $0xa80] ss:$8 sps:$4 sm:$0xff]   ;;  %v5080_v0 = vld [vmem:[#allocation5 + $0xc74] ss:$8 sps:$4 sm:$0xff]   ;;  %v5078_v7 = vld [vmem:[#allocation5 + $0xc70] ss:$8 sps:$4 sm:$0xff]  }
 0x16e   :  { %v5071_v63 = vld [vmem:[#allocation5 + $0xb80] ss:$8 sps:$4 sm:$0xff]   ;;  %v5081_v8 = vld [vmem:[#allocation5 + $0xd70] ss:$8 sps:$4 sm:$0xff]  }
 0x16f   :  { %3669 = vmatpush1.bf16.msra.mxu0 %v4990_v45  ;;  %v5469_v45 = vld [vmem:[#allocation2 + $0x60] sm:$0xff] }
 0x170   :  { %3710 = vmatpush1.bf16.msra.mxu1 %v4993_v6  ;;  %3670 = vmatprep.subr.bf16.mxu0 %v4998_v9  ;;  %v5471_v6 = vld [vmem:[#allocation2 + $0x68] sm:$0xff] }
 0x171   :  { %3711 = vmatprep.subr.bf16.mxu1 %v5001_v10  ;;  %v5086_v9 = vld [vmem:[#allocation5 + $0xc64] ss:$8 sps:$4 sm:$0xff]   ;;  %v3955_v52 = vcombine.high %v5471_v6, %v5471_v6 }
 0x172   :  { %v5089_v10 = vld [vmem:[#allocation5 + $0xd64] ss:$8 sps:$4 sm:$0xff]  }
 0x173   :  { %3671 = vmatpush1.bf16.msra.mxu0 %v4996_v11  ;;  %v3953_v11 = vcombine.high %v5469_v45, %v5469_v45 }
 0x174   :  { %3712 = vmatpush1.bf16.msra.mxu1 %v4999_v49  ;;  %3672 = vmatprep.subr.bf16.mxu0 %v5004_v12 }
 0x175   :  { %3713 = vmatprep.subr.bf16.mxu1 %v5007_v13  ;;  %v5084_v13 = vld [vmem:[#allocation5 + $0xc60] ss:$8 sps:$4 sm:$0xff]  }
 0x177   :  { %3673 = vmatpush1.bf16.msra.mxu0 %v5002_v14  ;;  %v5087_v14 = vld [vmem:[#allocation5 + $0xd60] ss:$8 sps:$4 sm:$0xff]  }
 0x178   :  { %3714 = vmatpush1.bf16.msra.mxu1 %v5005_v15  ;;  %3674 = vmatprep.subr.bf16.mxu0 %v5010_v16 }
 0x179   :  { %3715 = vmatprep.subr.bf16.mxu1 %v5013_v17  ;;  %v5092_v17 = vld [vmem:[#allocation5 + $0xc54] ss:$8 sps:$4 sm:$0xff]  }
 0x17b   :  { %3675 = vmatpush1.bf16.msra.mxu0 %v5008_v21  ;;  %v5095_v21 = vld [vmem:[#allocation5 + $0xd54] ss:$8 sps:$4 sm:$0xff]  }
 0x17c   :  { %3716 = vmatpush1.bf16.msra.mxu1 %v5011_v22  ;;  %3676 = vmatprep.subr.bf16.mxu0 %v5016_v24 }
 0x17d   :  { %3717 = vmatprep.subr.bf16.mxu1 %v5019_v25 }
 0x17f   :  { %3677 = vmatpush1.bf16.msra.mxu0 %v5014_v26 }
 0x180   :  { %3718 = vmatpush1.bf16.msra.mxu1 %v5017_v27  ;;  %3678 = vmatprep.subr.bf16.mxu0 %v5022_v28  ;;  %v5093_v28 = vld [vmem:[#allocation5 + $0xd50] ss:$8 sps:$4 sm:$0xff]  }
 0x181   :  { %3719 = vmatprep.subr.bf16.mxu1 %v5025_v29 }
 0x183   :  { %3679 = vmatpush1.bf16.msra.mxu0 %v5020_v18 }
 0x184   :  { %3720 = vmatpush1.bf16.msra.mxu1 %v5023_v19  ;;  %3680 = vmatprep.subr.bf16.mxu0 %v5028_v30  ;;  %v5098_v19 = vld [vmem:[#allocation5 + $0xc44] ss:$8 sps:$4 sm:$0xff]  }
 0x185   :  { %3721 = vmatprep.subr.bf16.mxu1 %v5031_v33  ;;  %v5101_v30 = vld [vmem:[#allocation5 + $0xd44] ss:$8 sps:$4 sm:$0xff]   ;;  %v5096_v33 = vld [vmem:[#allocation5 + $0xc40] ss:$8 sps:$4 sm:$0xff]  }
 0x187   :  { %3681 = vmatpush2.bf16.msra.mxu0 %v5026_v34  ;;  %v5104_v34 = vld [vmem:[#allocation5 + $0xc34] ss:$8 sps:$4 sm:$0xff]  }
 0x188   :  { %3722 = vmatpush2.bf16.msra.mxu1 %v5029_v35  ;;  %3682 = vmatprep.subr.bf16.mxu0 %v5034_v20  ;;  %v5107_v35 = vld [vmem:[#allocation5 + $0xd34] ss:$8 sps:$4 sm:$0xff]   ;;  %v5102_v20 = vld [vmem:[#allocation5 + $0xc30] ss:$8 sps:$4 sm:$0xff]  }
 0x189   :  { %3723 = vmatprep.subr.bf16.mxu1 %v5037_v36  ;;  %v5105_v36 = vld [vmem:[#allocation5 + $0xd30] ss:$8 sps:$4 sm:$0xff]  }
 0x18b   :  { %3683 = vmatpush2.bf16.msra.mxu0 %v5032_v37  ;;  %v5110_v37 = vld [vmem:[#allocation5 + $0xc24] ss:$8 sps:$4 sm:$0xff]  }
 0x18c   :  { %3724 = vmatpush2.bf16.msra.mxu1 %v5035_v23  ;;  %3684 = vmatprep.subr.bf16.mxu0 %v5040_v38  ;;  %v5113_v23 = vld [vmem:[#allocation5 + $0xd24] ss:$8 sps:$4 sm:$0xff]   ;;  %v5108_v38 = vld [vmem:[#allocation5 + $0xc20] ss:$8 sps:$4 sm:$0xff]  }
 0x18d   :  { %3725 = vmatprep.subr.bf16.mxu1 %v5043_v39  ;;  %v5111_v39 = vld [vmem:[#allocation5 + $0xd20] ss:$8 sps:$4 sm:$0xff]  }
 0x18f   :  { %3685 = vmatpush2.bf16.msra.mxu0 %v5038_v40  ;;  %v5116_v40 = vld [vmem:[#allocation5 + $0xc14] ss:$8 sps:$4 sm:$0xff]  }
 0x190   :  { %3726 = vmatpush2.bf16.msra.mxu1 %v5041_v41  ;;  %3686 = vmatprep.subr.bf16.mxu0 %v5046_v42  ;;  %v5119_v41 = vld [vmem:[#allocation5 + $0xd14] ss:$8 sps:$4 sm:$0xff]   ;;  %v5114_v42 = vld [vmem:[#allocation5 + $0xc10] ss:$8 sps:$4 sm:$0xff]  }
 0x191   :  { %3727 = vmatprep.subr.bf16.mxu1 %v5049_v43  ;;  %v5117_v43 = vld [vmem:[#allocation5 + $0xd10] ss:$8 sps:$4 sm:$0xff]  }
 0x193   :  { %3687 = vmatpush2.bf16.msra.mxu0 %v5044_v44  ;;  %v5122_v44 = vld [vmem:[#allocation5 + $0xc04] ss:$8 sps:$4 sm:$0xff]  }
 0x194   :  { %3728 = vmatpush2.bf16.msra.mxu1 %v5047_v46  ;;  %3688 = vmatprep.subr.bf16.mxu0 %v5052_v47  ;;  %v5125_v46 = vld [vmem:[#allocation5 + $0xd04] ss:$8 sps:$4 sm:$0xff]   ;;  %v5120_v47 = vld [vmem:[#allocation5 + $0xc00] ss:$8 sps:$4 sm:$0xff]  }
 0x195   :  { %3729 = vmatprep.subr.bf16.mxu1 %v5055_v48  ;;  %v5123_v48 = vld [vmem:[#allocation5 + $0xd00] ss:$8 sps:$4 sm:$0xff]  }
 0x197   :  { %3689 = vmatpush2.bf16.msra.mxu0 %v5050_v50  ;;  %v5128_v50 = vld [vmem:[#allocation5 + $0xcf4] ss:$8 sps:$4 sm:$0xff]  }
 0x198   :  { %3730 = vmatpush2.bf16.msra.mxu1 %v5053_v51  ;;  %3690 = vmatprep.subr.bf16.mxu0 %v5058_v54  ;;  %v5131_v51 = vld [vmem:[#allocation5 + $0xdf4] ss:$8 sps:$4 sm:$0xff]   ;;  %v5126_v54 = vld [vmem:[#allocation5 + $0xcf0] ss:$8 sps:$4 sm:$0xff]  }
 0x199   :  { %3731 = vmatprep.subr.bf16.mxu1 %v5061_v55  ;;  %v5129_v55 = vld [vmem:[#allocation5 + $0xdf0] ss:$8 sps:$4 sm:$0xff]  }
 0x19b   :  { %3691 = vmatpush2.bf16.msra.mxu0 %v5056_v56  ;;  %v5134_v56 = vld [vmem:[#allocation5 + $0xce4] ss:$8 sps:$4 sm:$0xff]  }
 0x19c   :  { %3732 = vmatpush2.bf16.msra.mxu1 %v5059_v57  ;;  %3692 = vmatprep.subr.bf16.mxu0 %v5064_v58  ;;  %v5137_v57 = vld [vmem:[#allocation5 + $0xde4] ss:$8 sps:$4 sm:$0xff]   ;;  %v5132_v58 = vld [vmem:[#allocation5 + $0xce0] ss:$8 sps:$4 sm:$0xff]  }
 0x19d   :  { %3733 = vmatprep.subr.bf16.mxu1 %v5067_v31  ;;  %v5135_v31 = vld [vmem:[#allocation5 + $0xde0] ss:$8 sps:$4 sm:$0xff]  }
 0x19f   :  { %3693 = vmatpush2.bf16.msra.mxu0 %v5062_v59  ;;  %v5140_v59 = vld [vmem:[#allocation5 + $0xcd4] ss:$8 sps:$4 sm:$0xff]  }
 0x1a0   :  { %3734 = vmatpush2.bf16.msra.mxu1 %v5065_v32  ;;  %3694 = vmatprep.subr.bf16.mxu0 %v5070_v60  ;;  %v5143_v32 = vld [vmem:[#allocation5 + $0xdd4] ss:$8 sps:$4 sm:$0xff]   ;;  %v5138_v60 = vld [vmem:[#allocation5 + $0xcd0] ss:$8 sps:$4 sm:$0xff]  }
 0x1a1   :  { %3735 = vmatprep.subr.bf16.mxu1 %v5073_v61  ;;  %v5141_v61 = vld [vmem:[#allocation5 + $0xdd0] ss:$8 sps:$4 sm:$0xff]  }
 0x1a3   :  { %3695 = vmatpush2.bf16.msra.mxu0 %v5068_v62  ;;  %v5146_v62 = vld [vmem:[#allocation5 + $0xcc4] ss:$8 sps:$4 sm:$0xff]  }
 0x1a4   :  { %3736 = vmatpush2.bf16.msra.mxu1 %v5071_v63  ;;  %3746 = vmatprep.subr.bf16.mxu0 %v5080_v0  ;;  %v5149_v63 = vld [vmem:[#allocation5 + $0xdc4] ss:$8 sps:$4 sm:$0xff]   ;;  %v5144_v0 = vld [vmem:[#allocation5 + $0xcc0] ss:$8 sps:$4 sm:$0xff]  }
 0x1a5   :  { %3787 = vmatprep.subr.bf16.mxu1 %v5083_v2  ;;  %v5147_v2 = vld [vmem:[#allocation5 + $0xdc0] ss:$8 sps:$4 sm:$0xff]  }
 0x1a6   :  { %v3452_v49 = vpop.f32.mrf.mxu0  ;;  %3697 = vmatmul.mubr.bf16.vlgmr.msra.gmra.mxu0 %v3948_v3  ;;  %v5152_v3 = vld [vmem:[#allocation5 + $0xcb4] ss:$8 sps:$4 sm:$0xff]  }
 0x1a7   :  { %v3493_v53 = vpop.f32.mrf.mxu1  ;;  %3738 = vmatmul.mubr.bf16.vlgmr.msra.gmra.mxu1 %v3950_v4  ;;  %v3453_v12 = vadd.f32 %v3452_v49, %v5460_v1  ;;  %3747 = vmatpush1.bf16.msra.mxu0 %v5078_v7  ;;  %v5090_v1 = vld [vmem:[#allocation5 + $0xc50] ss:$8 sps:$4 sm:$0xff]   ;;  %v5155_v4 = vld [vmem:[#allocation5 + $0xdb4] ss:$8 sps:$4 sm:$0xff]  }
 0x1a8   :  { %3788 = vmatpush1.bf16.msra.mxu1 %v5081_v8  ;;  %v3454_v15 = vpop.f32.mrf.mxu0  ;;  %3748 = vmatprep.subr.bf16.mxu0 %v5086_v9  ;;  %v5150_v7 = vld [vmem:[#allocation5 + $0xcb0] ss:$8 sps:$4 sm:$0xff]   ;;  %v5158_v9 = vld [vmem:[#allocation5 + $0xca4] ss:$8 sps:$4 sm:$0xff]   ;;  %v5164_v49 = vld [vmem:[#allocation5 + $0xc94] ss:$8 sps:$4 sm:$0xff]  }
 0x1a9   :  { %v3495_v16 = vpop.f32.mrf.mxu1  ;;  %3789 = vmatprep.subr.bf16.mxu1 %v5089_v10  ;;  %v5478_v22 = vadd.f32 %v3493_v53, %v3453_v12  ;;  %v3455_v24 = vadd.f32 %v3454_v15, %v5463_v5  ;;  %3778 = vmatprep.mubr.bf16.mxu0 %v3953_v11  ;;  %v5099_v5 = vld [vmem:[#allocation5 + $0xd40] ss:$8 sps:$4 sm:$0xff]   ;;  %v5153_v8 = vld [vmem:[#allocation5 + $0xdb0] ss:$8 sps:$4 sm:$0xff]   ;;  %v5161_v10 = vld [vmem:[#allocation5 + $0xda4] ss:$8 sps:$4 sm:$0xff]  }
 0x1aa   :  { %3819 = vmatprep.mubr.bf16.mxu1 %v3955_v52  ;;  %v3456_v25 = vpop.f32.mrf.mxu0  ;;  %v5156_v11 = vld [vmem:[#allocation5 + $0xca0] ss:$8 sps:$4 sm:$0xff]   ;;  %v5167_v53 = vld [vmem:[#allocation5 + $0xd94] ss:$8 sps:$4 sm:$0xff]   ;;  %v5162_v12 = vld [vmem:[#allocation5 + $0xc90] ss:$8 sps:$4 sm:$0xff]  }
 0x1ab   :  { %v3497_v26 = vpop.f32.mrf.mxu1  ;;  %v5481_v27 = vadd.f32 %v3495_v16, %v3455_v24  ;;  %3749 = vmatpush1.bf16.msra.mxu0 %v5084_v13  ;;  %v5159_v52 = vld [vmem:[#allocation5 + $0xda0] ss:$8 sps:$4 sm:$0xff]   ;;  %v5165_v13 = vld [vmem:[#allocation5 + $0xd90] ss:$8 sps:$4 sm:$0xff]   ;;  %v5173_v15 = vld [vmem:[#allocation5 + $0xd84] ss:$8 sps:$4 sm:$0xff]   ;;  %v3952_v25 = vcombine.low %v5469_v45, %v5469_v45 }
 0x1ac   :  { %3790 = vmatpush1.bf16.msra.mxu1 %v5087_v14  ;;  %v3457_v29 = vpop.f32.mrf.mxu0  ;;  %3750 = vmatprep.subr.bf16.mxu0 %v5092_v17  ;;  %v5170_v14 = vld [vmem:[#allocation5 + $0xc84] ss:$8 sps:$4 sm:$0xff]   ;;  %v5168_v16 = vld [vmem:[#allocation5 + $0xc80] ss:$8 sps:$4 sm:$0xff]   ;;  %v5183_v24 = vld [vmem:[#allocation5 + $0xf74] ss:$8 sps:$4 sm:$0xff]   ;;  %v3954_v26 = vcombine.low %v5471_v6, %v5471_v6 }
 0x1ad   :  { %v3498_v18 = vpop.f32.mrf.mxu1  ;;  %3791 = vmatprep.subr.bf16.mxu1 %v5095_v21  ;;  %v5171_v17 = vld [vmem:[#allocation5 + $0xd80] ss:$8 sps:$4 sm:$0xff]   ;;  %v5180_v21 = vld [vmem:[#allocation5 + $0xe74] ss:$8 sps:$4 sm:$0xff]   ;;  %v5178_v29 = vld [vmem:[#allocation5 + $0xe70] ss:$8 sps:$4 sm:$0xff]  }
 0x1ae   :  { %v5181_v18 = vld [vmem:[#allocation5 + $0xf70] ss:$8 sps:$4 sm:$0xff]  }
 0x1af   :  { %3751 = vmatpush1.bf16.msra.mxu0 %v5090_v1  ;;  %v5487_v1 = vld [vmem:[#allocation2 + $0x70] sm:$0xff] }
 0x1b0   :  { %3792 = vmatpush1.bf16.msra.mxu1 %v5093_v28  ;;  %3752 = vmatprep.subr.bf16.mxu0 %v5098_v19  ;;  %v5489_v28 = vld [vmem:[#allocation2 + $0x78] sm:$0xff]  ;;  %v5186_v19 = vld [vmem:[#allocation5 + $0xe64] ss:$8 sps:$4 sm:$0xff]  }
 0x1b1   :  { %3793 = vmatprep.subr.bf16.mxu1 %v5101_v30  ;;  %v5189_v30 = vld [vmem:[#allocation5 + $0xf64] ss:$8 sps:$4 sm:$0xff]   ;;  %v3959_v45 = vcombine.high %v5489_v28, %v5489_v28 }
 0x1b3   :  { %3753 = vmatpush1.bf16.msra.mxu0 %v5096_v33  ;;  %v3957_v33 = vcombine.high %v5487_v1, %v5487_v1 }
 0x1b4   :  { %3794 = vmatpush1.bf16.msra.mxu1 %v5099_v5  ;;  %3754 = vmatprep.subr.bf16.mxu0 %v5104_v34 }
 0x1b5   :  { %3795 = vmatprep.subr.bf16.mxu1 %v5107_v35  ;;  %v5184_v35 = vld [vmem:[#allocation5 + $0xe60] ss:$8 sps:$4 sm:$0xff]  }
 0x1b7   :  { %3755 = vmatpush1.bf16.msra.mxu0 %v5102_v20  ;;  %v5187_v20 = vld [vmem:[#allocation5 + $0xf60] ss:$8 sps:$4 sm:$0xff]  }
 0x1b8   :  { %3796 = vmatpush1.bf16.msra.mxu1 %v5105_v36  ;;  %3756 = vmatprep.subr.bf16.mxu0 %v5110_v37 }
 0x1b9   :  { %3797 = vmatprep.subr.bf16.mxu1 %v5113_v23  ;;  %v5192_v23 = vld [vmem:[#allocation5 + $0xe54] ss:$8 sps:$4 sm:$0xff]  }
 0x1bb   :  { %3757 = vmatpush1.bf16.msra.mxu0 %v5108_v38  ;;  %v5195_v38 = vld [vmem:[#allocation5 + $0xf54] ss:$8 sps:$4 sm:$0xff]  }
 0x1bc   :  { %3798 = vmatpush1.bf16.msra.mxu1 %v5111_v39  ;;  %3758 = vmatprep.subr.bf16.mxu0 %v5116_v40 }
 0x1bd   :  { %3799 = vmatprep.subr.bf16.mxu1 %v5119_v41 }
 0x1bf   :  { %3759 = vmatpush1.bf16.msra.mxu0 %v5114_v42 }
 0x1c0   :  { %3800 = vmatpush1.bf16.msra.mxu1 %v5117_v43  ;;  %3760 = vmatprep.subr.bf16.mxu0 %v5122_v44  ;;  %v5193_v44 = vld [vmem:[#allocation5 + $0xf50] ss:$8 sps:$4 sm:$0xff]  }
 0x1c1   :  { %3801 = vmatprep.subr.bf16.mxu1 %v5125_v46 }
 0x1c3   :  { %3761 = vmatpush1.bf16.msra.mxu0 %v5120_v47 }
 0x1c4   :  { %3802 = vmatpush1.bf16.msra.mxu1 %v5123_v48  ;;  %3762 = vmatprep.subr.bf16.mxu0 %v5128_v50  ;;  %v5198_v48 = vld [vmem:[#allocation5 + $0xe44] ss:$8 sps:$4 sm:$0xff]  }
 0x1c5   :  { %3803 = vmatprep.subr.bf16.mxu1 %v5131_v51  ;;  %v5201_v50 = vld [vmem:[#allocation5 + $0xf44] ss:$8 sps:$4 sm:$0xff]   ;;  %v5196_v51 = vld [vmem:[#allocation5 + $0xe40] ss:$8 sps:$4 sm:$0xff]  }
 0x1c7   :  { %3763 = vmatpush2.bf16.msra.mxu0 %v5126_v54  ;;  %v5204_v54 = vld [vmem:[#allocation5 + $0xe34] ss:$8 sps:$4 sm:$0xff]  }
 0x1c8   :  { %3804 = vmatpush2.bf16.msra.mxu1 %v5129_v55  ;;  %3764 = vmatprep.subr.bf16.mxu0 %v5134_v56  ;;  %v5207_v55 = vld [vmem:[#allocation5 + $0xf34] ss:$8 sps:$4 sm:$0xff]   ;;  %v5202_v56 = vld [vmem:[#allocation5 + $0xe30] ss:$8 sps:$4 sm:$0xff]  }
 0x1c9   :  { %3805 = vmatprep.subr.bf16.mxu1 %v5137_v57  ;;  %v5205_v57 = vld [vmem:[#allocation5 + $0xf30] ss:$8 sps:$4 sm:$0xff]  }
 0x1cb   :  { %3765 = vmatpush2.bf16.msra.mxu0 %v5132_v58  ;;  %v5210_v58 = vld [vmem:[#allocation5 + $0xe24] ss:$8 sps:$4 sm:$0xff]  }
 0x1cc   :  { %3806 = vmatpush2.bf16.msra.mxu1 %v5135_v31  ;;  %3766 = vmatprep.subr.bf16.mxu0 %v5140_v59  ;;  %v5213_v31 = vld [vmem:[#allocation5 + $0xf24] ss:$8 sps:$4 sm:$0xff]   ;;  %v5208_v59 = vld [vmem:[#allocation5 + $0xe20] ss:$8 sps:$4 sm:$0xff]  }
 0x1cd   :  { %3807 = vmatprep.subr.bf16.mxu1 %v5143_v32  ;;  %v5211_v32 = vld [vmem:[#allocation5 + $0xf20] ss:$8 sps:$4 sm:$0xff]  }
 0x1cf   :  { %3767 = vmatpush2.bf16.msra.mxu0 %v5138_v60  ;;  %v5216_v60 = vld [vmem:[#allocation5 + $0xe14] ss:$8 sps:$4 sm:$0xff]  }
 0x1d0   :  { %3808 = vmatpush2.bf16.msra.mxu1 %v5141_v61  ;;  %3768 = vmatprep.subr.bf16.mxu0 %v5146_v62  ;;  %v5219_v61 = vld [vmem:[#allocation5 + $0xf14] ss:$8 sps:$4 sm:$0xff]   ;;  %v5214_v62 = vld [vmem:[#allocation5 + $0xe10] ss:$8 sps:$4 sm:$0xff]  }
 0x1d1   :  { %3809 = vmatprep.subr.bf16.mxu1 %v5149_v63  ;;  %v5217_v63 = vld [vmem:[#allocation5 + $0xf10] ss:$8 sps:$4 sm:$0xff]  }
 0x1d3   :  { %3769 = vmatpush2.bf16.msra.mxu0 %v5144_v0  ;;  %v5222_v0 = vld [vmem:[#allocation5 + $0xe04] ss:$8 sps:$4 sm:$0xff]  }
 0x1d4   :  { %3810 = vmatpush2.bf16.msra.mxu1 %v5147_v2  ;;  %3770 = vmatprep.subr.bf16.mxu0 %v5152_v3  ;;  %v5225_v2 = vld [vmem:[#allocation5 + $0xf04] ss:$8 sps:$4 sm:$0xff]   ;;  %v5220_v3 = vld [vmem:[#allocation5 + $0xe00] ss:$8 sps:$4 sm:$0xff]  }
 0x1d5   :  { %3811 = vmatprep.subr.bf16.mxu1 %v5155_v4  ;;  %v5223_v4 = vld [vmem:[#allocation5 + $0xf00] ss:$8 sps:$4 sm:$0xff]  }
 0x1d7   :  { %3771 = vmatpush2.bf16.msra.mxu0 %v5150_v7  ;;  %v5228_v7 = vld [vmem:[#allocation5 + $0xef4] ss:$8 sps:$4 sm:$0xff]  }
 0x1d8   :  { %3812 = vmatpush2.bf16.msra.mxu1 %v5153_v8  ;;  %3772 = vmatprep.subr.bf16.mxu0 %v5158_v9  ;;  %v5231_v8 = vld [vmem:[#allocation5 + $0xff4] ss:$8 sps:$4 sm:$0xff]   ;;  %v5226_v9 = vld [vmem:[#allocation5 + $0xef0] ss:$8 sps:$4 sm:$0xff]  }
 0x1d9   :  { %3813 = vmatprep.subr.bf16.mxu1 %v5161_v10  ;;  %v5229_v10 = vld [vmem:[#allocation5 + $0xff0] ss:$8 sps:$4 sm:$0xff]  }
 0x1db   :  { %3773 = vmatpush2.bf16.msra.mxu0 %v5156_v11  ;;  %v5234_v11 = vld [vmem:[#allocation5 + $0xee4] ss:$8 sps:$4 sm:$0xff]  }
 0x1dc   :  { %3814 = vmatpush2.bf16.msra.mxu1 %v5159_v52  ;;  %3774 = vmatprep.subr.bf16.mxu0 %v5164_v49  ;;  %v5237_v52 = vld [vmem:[#allocation5 + $0xfe4] ss:$8 sps:$4 sm:$0xff]   ;;  %v5232_v49 = vld [vmem:[#allocation5 + $0xee0] ss:$8 sps:$4 sm:$0xff]  }
 0x1dd   :  { %3815 = vmatprep.subr.bf16.mxu1 %v5167_v53  ;;  %v5235_v53 = vld [vmem:[#allocation5 + $0xfe0] ss:$8 sps:$4 sm:$0xff]  }
 0x1df   :  { %3775 = vmatpush2.bf16.msra.mxu0 %v5162_v12  ;;  %v5240_v12 = vld [vmem:[#allocation5 + $0xed4] ss:$8 sps:$4 sm:$0xff]  }
 0x1e0   :  { %3816 = vmatpush2.bf16.msra.mxu1 %v5165_v13  ;;  %3776 = vmatprep.subr.bf16.mxu0 %v5170_v14  ;;  %v5243_v13 = vld [vmem:[#allocation5 + $0xfd4] ss:$8 sps:$4 sm:$0xff]   ;;  %v5238_v14 = vld [vmem:[#allocation5 + $0xed0] ss:$8 sps:$4 sm:$0xff]  }
 0x1e1   :  { %3817 = vmatprep.subr.bf16.mxu1 %v5173_v15  ;;  %v5241_v15 = vld [vmem:[#allocation5 + $0xfd0] ss:$8 sps:$4 sm:$0xff]  }
 0x1e3   :  { %3777 = vmatpush2.bf16.msra.mxu0 %v5168_v16  ;;  %v5246_v16 = vld [vmem:[#allocation5 + $0xec4] ss:$8 sps:$4 sm:$0xff]  }
 0x1e4   :  { %3818 = vmatpush2.bf16.msra.mxu1 %v5171_v17  ;;  %3828 = vmatprep.subr.bf16.mxu0 %v5180_v21  ;;  %v5249_v17 = vld [vmem:[#allocation5 + $0xfc4] ss:$8 sps:$4 sm:$0xff]   ;;  %v5244_v21 = vld [vmem:[#allocation5 + $0xec0] ss:$8 sps:$4 sm:$0xff]  }
 0x1e5   :  { %3869 = vmatprep.subr.bf16.mxu1 %v5183_v24  ;;  %v5247_v24 = vld [vmem:[#allocation5 + $0xfc0] ss:$8 sps:$4 sm:$0xff]  }
 0x1e6   :  { %v3534_v5 = vpop.f32.mrf.mxu0  ;;  %3779 = vmatmul.mubr.bf16.vlgmr.msra.gmra.mxu0 %v3952_v25  ;;  %v5252_v25 = vld [vmem:[#allocation5 + $0xeb4] ss:$8 sps:$4 sm:$0xff]  }
 0x1e7   :  { %v3575_v6 = vpop.f32.mrf.mxu1  ;;  %3820 = vmatmul.mubr.bf16.vlgmr.msra.gmra.mxu1 %v3954_v26  ;;  %v3535_v34 = vadd.f32 %v3534_v5, %v5478_v22  ;;  %3829 = vmatpush1.bf16.msra.mxu0 %v5178_v29  ;;  %v5190_v22 = vld [vmem:[#allocation5 + $0xe50] ss:$8 sps:$4 sm:$0xff]   ;;  %v5255_v26 = vld [vmem:[#allocation5 + $0xfb4] ss:$8 sps:$4 sm:$0xff]  }
 0x1e8   :  { %3870 = vmatpush1.bf16.msra.mxu1 %v5181_v18  ;;  %v3536_v36 = vpop.f32.mrf.mxu0  ;;  %3830 = vmatprep.subr.bf16.mxu0 %v5186_v19  ;;  %v5250_v29 = vld [vmem:[#allocation5 + $0xeb0] ss:$8 sps:$4 sm:$0xff]   ;;  %v5258_v19 = vld [vmem:[#allocation5 + $0xea4] ss:$8 sps:$4 sm:$0xff]   ;;  %v5264_v5 = vld [vmem:[#allocation5 + $0xe94] ss:$8 sps:$4 sm:$0xff]  }
 0x1e9   :  { %v3577_v37 = vpop.f32.mrf.mxu1  ;;  %3871 = vmatprep.subr.bf16.mxu1 %v5189_v30  ;;  %v5496_v39 = vadd.f32 %v3575_v6, %v3535_v34  ;;  %v3537_v40 = vadd.f32 %v3536_v36, %v5481_v27  ;;  %3860 = vmatprep.mubr.bf16.mxu0 %v3957_v33  ;;  %v5199_v27 = vld [vmem:[#allocation5 + $0xf40] ss:$8 sps:$4 sm:$0xff]   ;;  %v5253_v18 = vld [vmem:[#allocation5 + $0xfb0] ss:$8 sps:$4 sm:$0xff]   ;;  %v5261_v30 = vld [vmem:[#allocation5 + $0xfa4] ss:$8 sps:$4 sm:$0xff]  }
 0x1ea   :  { %3901 = vmatprep.mubr.bf16.mxu1 %v3959_v45  ;;  %v3538_v41 = vpop.f32.mrf.mxu0  ;;  %v5256_v33 = vld [vmem:[#allocation5 + $0xea0] ss:$8 sps:$4 sm:$0xff]   ;;  %v5267_v6 = vld [vmem:[#allocation5 + $0xf94] ss:$8 sps:$4 sm:$0xff]   ;;  %v5262_v34 = vld [vmem:[#allocation5 + $0xe90] ss:$8 sps:$4 sm:$0xff]  }
 0x1eb   :  { %v3579_v42 = vpop.f32.mrf.mxu1  ;;  %v5499_v43 = vadd.f32 %v3577_v37, %v3537_v40  ;;  %3831 = vmatpush1.bf16.msra.mxu0 %v5184_v35  ;;  %v5259_v45 = vld [vmem:[#allocation5 + $0xfa0] ss:$8 sps:$4 sm:$0xff]   ;;  %v5265_v35 = vld [vmem:[#allocation5 + $0xf90] ss:$8 sps:$4 sm:$0xff]   ;;  %v5273_v36 = vld [vmem:[#allocation5 + $0xf84] ss:$8 sps:$4 sm:$0xff]   ;;  %v3958_v40 = vcombine.low %v5489_v28, %v5489_v28 }
 0x1ec   :  { %3872 = vmatpush1.bf16.msra.mxu1 %v5187_v20  ;;  %v3539_v46 = vpop.f32.mrf.mxu0  ;;  %3832 = vmatprep.subr.bf16.mxu0 %v5192_v23  ;;  %v5270_v20 = vld [vmem:[#allocation5 + $0xe84] ss:$8 sps:$4 sm:$0xff]   ;;  %v5268_v37 = vld [vmem:[#allocation5 + $0xe80] ss:$8 sps:$4 sm:$0xff]  }
 0x1ed   :  { %v3580_v47 = vpop.f32.mrf.mxu1  ;;  %3873 = vmatprep.subr.bf16.mxu1 %v5195_v38  ;;  %v5271_v23 = vld [vmem:[#allocation5 + $0xf80] ss:$8 sps:$4 sm:$0xff]   ;;  %v3956_v38 = vcombine.low %v5487_v1, %v5487_v1 }
 0x1ef   :  { %3833 = vmatpush1.bf16.msra.mxu0 %v5190_v22 }
 0x1f0   :  { %3874 = vmatpush1.bf16.msra.mxu1 %v5193_v44  ;;  %3834 = vmatprep.subr.bf16.mxu0 %v5198_v48 }
 0x1f1   :  { %3875 = vmatprep.subr.bf16.mxu1 %v5201_v50 }
 0x1f3   :  { %3835 = vmatpush1.bf16.msra.mxu0 %v5196_v51 }
 0x1f4   :  { %3876 = vmatpush1.bf16.msra.mxu1 %v5199_v27  ;;  %3836 = vmatprep.subr.bf16.mxu0 %v5204_v54 }
 0x1f5   :  { %3877 = vmatprep.subr.bf16.mxu1 %v5207_v55 }
 0x1f7   :  { %3837 = vmatpush1.bf16.msra.mxu0 %v5202_v56 }
 0x1f8   :  { %3878 = vmatpush1.bf16.msra.mxu1 %v5205_v57  ;;  %3838 = vmatprep.subr.bf16.mxu0 %v5210_v58 }
 0x1f9   :  { %3879 = vmatprep.subr.bf16.mxu1 %v5213_v31 }
 0x1fb   :  { %3839 = vmatpush1.bf16.msra.mxu0 %v5208_v59 }
 0x1fc   :  { %3880 = vmatpush1.bf16.msra.mxu1 %v5211_v32  ;;  %3840 = vmatprep.subr.bf16.mxu0 %v5216_v60 }
 0x1fd   :  { %3881 = vmatprep.subr.bf16.mxu1 %v5219_v61 }
 0x1ff   :  { %3841 = vmatpush1.bf16.msra.mxu0 %v5214_v62 }
 0x200   :  { %3882 = vmatpush1.bf16.msra.mxu1 %v5217_v63  ;;  %3842 = vmatprep.subr.bf16.mxu0 %v5222_v0 }
 0x201   :  { %3883 = vmatprep.subr.bf16.mxu1 %v5225_v2 }
 0x203   :  { %3843 = vmatpush1.bf16.msra.mxu0 %v5220_v3 }
 0x204   :  { %3884 = vmatpush1.bf16.msra.mxu1 %v5223_v4  ;;  %3844 = vmatprep.subr.bf16.mxu0 %v5228_v7 }
 0x205   :  { %3885 = vmatprep.subr.bf16.mxu1 %v5231_v8 }
 0x207   :  { %3845 = vmatpush2.bf16.msra.mxu0 %v5226_v9 }
 0x208   :  { %3886 = vmatpush2.bf16.msra.mxu1 %v5229_v10  ;;  %3846 = vmatprep.subr.bf16.mxu0 %v5234_v11 }
 0x209   :  { %3887 = vmatprep.subr.bf16.mxu1 %v5237_v52 }
 0x20b   :  { %3847 = vmatpush2.bf16.msra.mxu0 %v5232_v49 }
 0x20c   :  { %3888 = vmatpush2.bf16.msra.mxu1 %v5235_v53  ;;  %3848 = vmatprep.subr.bf16.mxu0 %v5240_v12 }
 0x20d   :  { %3889 = vmatprep.subr.bf16.mxu1 %v5243_v13 }
 0x20f   :  { %3849 = vmatpush2.bf16.msra.mxu0 %v5238_v14 }
 0x210   :  { %3890 = vmatpush2.bf16.msra.mxu1 %v5241_v15  ;;  %3850 = vmatprep.subr.bf16.mxu0 %v5246_v16 }
 0x211   :  { %3891 = vmatprep.subr.bf16.mxu1 %v5249_v17 }
 0x213   :  { %3851 = vmatpush2.bf16.msra.mxu0 %v5244_v21 }
 0x214   :  { %3892 = vmatpush2.bf16.msra.mxu1 %v5247_v24  ;;  %3852 = vmatprep.subr.bf16.mxu0 %v5252_v25 }
 0x215   :  { %3893 = vmatprep.subr.bf16.mxu1 %v5255_v26 }
 0x217   :  { %3853 = vmatpush2.bf16.msra.mxu0 %v5250_v29 }
 0x218   :  { %3894 = vmatpush2.bf16.msra.mxu1 %v5253_v18  ;;  %3854 = vmatprep.subr.bf16.mxu0 %v5258_v19 }
 0x219   :  { %3895 = vmatprep.subr.bf16.mxu1 %v5261_v30 }
 0x21b   :  { %3855 = vmatpush2.bf16.msra.mxu0 %v5256_v33 }
 0x21c   :  { %3896 = vmatpush2.bf16.msra.mxu1 %v5259_v45  ;;  %3856 = vmatprep.subr.bf16.mxu0 %v5264_v5 }
 0x21d   :  { %3897 = vmatprep.subr.bf16.mxu1 %v5267_v6 }
 0x21f   :  { %3857 = vmatpush2.bf16.msra.mxu0 %v5262_v34 }
 0x220   :  { %3898 = vmatpush2.bf16.msra.mxu1 %v5265_v35  ;;  %3858 = vmatprep.subr.bf16.mxu0 %v5270_v20 }
 0x221   :  { %3899 = vmatprep.subr.bf16.mxu1 %v5273_v36 }
 0x223   :  { %3859 = vmatpush2.bf16.msra.mxu0 %v5268_v37 }
 0x224   :  { %3900 = vmatpush2.bf16.msra.mxu1 %v5271_v23 }
 0x226   :  { %v3616_v41 = vpop.f32.mrf.mxu0  ;;  %3861 = vmatmul.mubr.bf16.vlgmr.msra.gmra.mxu0 %v3956_v38 }
 0x227   :  { %v3657_v42 = vpop.f32.mrf.mxu1  ;;  %3902 = vmatmul.mubr.bf16.vlgmr.msra.gmra.mxu1 %v3958_v40  ;;  %v3617_v22 = vadd.f32 %v3616_v41, %v5496_v39 }
 0x228   :  { %v3618_v44 = vpop.f32.mrf.mxu0 }
 0x229   :  { %v3659_v46 = vpop.f32.mrf.mxu1  ;;  %v3658_v47 = vadd.f32 %v3657_v42, %v3617_v22  ;;  %v3619_v48 = vadd.f32 %v3618_v44, %v5499_v43 }
 0x22a   :  { %v3620_v50 = vpop.f32.mrf.mxu0 }
 0x22b   :  { %v3661_v51 = vpop.f32.mrf.mxu1  ;;  %v3660_v27 = vadd.f32 %v3659_v46, %v3619_v48 }
 0x22c   :  { %v3621_v1 = vpop.f32.mrf.mxu0 }
 0x22d   :  { %v3662_v54 = vpop.f32.mrf.mxu1 }
 0x266   :  { %v3698_v55 = vpop.f32.mrf.mxu0 }
 0x267   :  { %v3739_v28 = vpop.f32.mrf.mxu1  ;;  %v3699_v56 = vadd.f32 %v3698_v55, %v3658_v47 }
 0x268   :  { %v3700_v57 = vpop.f32.mrf.mxu0 }
 0x269   :  { %v3741_v58 = vpop.f32.mrf.mxu1  ;;  %v3740_v31 = vadd.f32 %v3739_v28, %v3699_v56  ;;  %v3701_v59 = vadd.f32 %v3700_v57, %v3660_v27 }
 0x26a   :  { %v3702_v32 = vpop.f32.mrf.mxu0 }
 0x26b   :  { %v3743_v60 = vpop.f32.mrf.mxu1  ;;  %v3742_v39 = vadd.f32 %v3741_v58, %v3701_v59 }
 0x26c   :  { %v3703_v61 = vpop.f32.mrf.mxu0 }
 0x26d   :  { %v3744_v62 = vpop.f32.mrf.mxu1 }
 0x2a6   :  { %v3780_v63 = vpop.f32.mrf.mxu0 }
 0x2a7   :  { %v3821_v0 = vpop.f32.mrf.mxu1  ;;  %v3781_v9 = vadd.f32 %v3780_v63, %v3740_v31 }
 0x2a8   :  { %v3782_v43 = vpop.f32.mrf.mxu0 }
 0x2a9   :  { %v3823_v2 = vpop.f32.mrf.mxu1  ;;  %v3783_v10 = vadd.f32 %v3782_v43, %v3742_v39  ;;  %v3822_v11 = vadd.f32 %v3821_v0, %v3781_v9 }
 0x2aa   :  { %v3784_v3 = vpop.f32.mrf.mxu0 }
 0x2ab   :  { %v3825_v4 = vpop.f32.mrf.mxu1  ;;  %v3824_v53 = vadd.f32 %v3823_v2, %v3783_v10 }
 0x2ac   :  { %v3785_v7 = vpop.f32.mrf.mxu0 }
 0x2ad   :  { %v3826_v8 = vpop.f32.mrf.mxu1 }
 0x2e6   :  { %v3862_v52 = vpop.f32.mrf.mxu0 }
 0x2e7   :  { %v3903_v49 = vpop.f32.mrf.mxu1  ;;  %v3863_v12 = vadd.f32 %v3862_v52, %v3822_v11 }
 0x2e8   :  { %v3864_v13 = vpop.f32.mrf.mxu0 }
 0x2e9   :  { %v3905_v14 = vpop.f32.mrf.mxu1  ;;  %v3904_v15 = vadd.f32 %v3903_v49, %v3863_v12  ;;  %v3865_v16 = vadd.f32 %v3864_v13, %v3824_v53 }
 0x2ea   :  { %v3866_v17 = vpop.f32.mrf.mxu0 }
 0x2eb   :  { %v3907_v21 = vpop.f32.mrf.mxu1  ;;  %3910 = vst [vmem:[#allocation8] sm:$0xff] %v3904_v15  ;;  %v3906_v24 = vadd.f32 %v3905_v14, %v3865_v16 }
 0x2ec   :  { %v3867_v25 = vpop.f32.mrf.mxu0 }
 0x2ed   :  { %v3908_v26 = vpop.f32.mrf.mxu1  ;;  %3911 = vst [vmem:[#allocation8 + $0x8] sm:$0xff] %v3906_v24 }
 0x2ee   :  { %5349 = shalt.err (!%p5346_p5)
}
 0x2ef   :  { %3921 = dma.vmem_to_hbm [thread:$0]  %s3919_s2, 256, %s5513_s3, [#allocation4]  }
 0x2f0   :  { %5362 = dma.done.wait [#allocation4], 256  }
 0x2f1   :  { %5363 = vsyncadd [#allocation4], 4294967040 }
 0x2f2   :  { %3925 = vsyncpa [#allocation3], 1 }
 0x2f3   :  { %3926 = vsyncpa [#allocation6], 1 }
 0x2f4   :  { %3927 = vsyncpa [#allocation4], 1 }

</bundles_post_ra>
